<compile_context>
chip_gen: v7x
topology: tpu7x:2x2x1
jax: 0.10.0
libtpu: 0.0.40
codegen_flags: <defaults>
</compile_context>

<pallas_src>
import functools

import jax
import jax.numpy as jnp
from jax.experimental import pallas as pl
from jax.experimental.pallas import tpu as pltpu

BN_EPS = 1e-5
_PREC = jax.lax.Precision.HIGHEST        # reference only


def _hsigmoid(x):
    # relu6(x + 3) / 6
    return jnp.clip(x + 3.0, 0.0, 6.0) * (1.0 / 6.0)


# ------------------------------- the kernel -------------------------------

def fuseblock_kernel(K, pad, use_se, B, H, W,
                     x_ref, w1_ref, dww_ref, dwh_ref, w2a_ref, w2b_ref,
                     se_w1_ref, se_w2t_ref, widx_ref,
                     bn1_g, bn1_b, dwbn1_g, dwbn1_b,
                     dwbn2_g, dwbn2_b, bn2_g, bn2_b,
                     o_ref):
    """Per-batch activations are 2-D (C, H*W) slabs; lane index = h*W + w."""
    HW = H * W
    inv_n = 1.0 / (B * HW)               # BN normalizes over (N, H, W)
    inv_hw = 1.0 / HW                    # SE pools over (H, W) per batch

    w1 = w1_ref[...]                     # (exp, Cin)
    exp, cin = w1.shape
    dww = dww_ref[...]                   # (exp, K) taps of the (1,K) conv
    dwh = dwh_ref[...]                   # (exp, K) taps of the (K,1) conv
    w2a = w2a_ref[...]                   # (Cout, exp)  -> out2 half of conv2
    w2b = w2b_ref[...]                   # (Cout, exp)  -> out3 half of conv2
    w_idx = widx_ref[...]                # (1, HW) int32: w coordinate per lane
    lane = jax.lax.broadcasted_iota(jnp.int32, (1, HW), 1)   # flat h*W + w
    ones_col = jnp.ones((HW, 1), jnp.float32)

    def mxu_dot(a, b):                   # MXU matmul, f32 accumulate
        return jnp.dot(a, b, preferred_element_type=jnp.float32)

    def col_sum(t):                      # (C, HW) -> (C, 1) lane reduction on MXU
        return mxu_dot(t, ones_col)

    def conv1(xb):                       # 1x1 conv: (Cin, HW) -> (exp, HW)
        if cin >= 16:
            return mxu_dot(w1, xb)       # MXU path for realistic Cin
        # tiny contraction depth: unrolled f32 VPU FMAs beat an MXU pass
        acc = w1[:, 0:1] * xb[0:1, :]
        for c in range(1, cin):
            acc = acc + w1[:, c:c + 1] * xb[c:c + 1, :]
        return acc

    def bn_fold(s1, s2, g_ref, beta_ref):
        """Training-mode BN folded into one per-channel scale/shift."""
        mean = s1 * inv_n
        var = jnp.maximum(s2 * inv_n - mean * mean, 0.0)
        scale = g_ref[...] * jax.lax.rsqrt(var + BN_EPS)
        shift = beta_ref[...] - mean * scale
        return scale, shift

    def tap_mask(idx, shift_amt, extent):
        # single compare per tap: only one bound can fail for a given sign
        if shift_amt > 0:
            return idx < (extent - shift_amt)
        return idx >= (-shift_amt)

    # per-tap edge masks, hoisted: lane-only, shared by every batch & channel
    masks_w = {k - pad: tap_mask(w_idx, k - pad, W)
               for k in range(K) if k != pad}
    masks_h = {k - pad: tap_mask(lane, (k - pad) * W, HW)
               for k in range(K) if k != pad}

    def dwconv(t, taps, masks, step):
        """Depthwise conv along one spatial axis: K shifted FMAs via
        pltpu.roll on the flat lane axis (XLU) + an edge mask per tap."""
        acc = t * taps[:, pad:pad + 1]                   # center tap, no shift
        for k in range(K):
            if k == pad:
                continue
            s = k - pad
            shifted = pltpu.roll(t, (-s * step) % HW, 1)
            acc = acc + jnp.where(masks[s], shifted, 0.0) * taps[:, k:k + 1]
        return acc

    # ---- stage 1: conv1 (1x1) + ReLU per batch; accumulate bn1 stats --------
    a1, s1, s2 = [], 0.0, 0.0
    for b in range(B):
        t = jnp.maximum(conv1(x_ref[b]), 0.0)            # (exp, HW)
        a1.append(t)
        s1 = s1 + col_sum(t)
        s2 = s2 + col_sum(t * t)
    sc1, sh1 = bn_fold(s1, s2, bn1_g, bn1_b)

    # ---- stage 2: BN1 apply + both depthwise convs; accumulate dw-BN stats --
    r2, r3 = [], []
    p1 = q1 = p2 = q2 = 0.0
    for b in range(B):
        o1 = a1[b] * sc1 + sh1
        a1[b] = None
        t2 = dwconv(o1, dww, masks_w, 1)                 # (1,K) conv along W
        t3 = dwconv(o1, dwh, masks_h, W)                 # (K,1) conv along H
        r2.append(t2)
        r3.append(t3)
        p1 = p1 + col_sum(t2)
        q1 = q1 + col_sum(t2 * t2)
        p2 = p2 + col_sum(t3)
        q2 = q2 + col_sum(t3 * t3)
    sc2, sh2 = bn_fold(p1, q1, dwbn1_g, dwbn1_b)
    sc3, sh3 = bn_fold(p2, q2, dwbn2_g, dwbn2_b)

    # ---- stage 3: dw-BN apply, SE, nonlinearity, conv2; bn2 stats -----------
    if use_se:
        se_w1 = se_w1_ref[...]           # (2*exp, hid)
        se_w2t = se_w2t_ref[...]         # (2*exp, hid) = fc2 weight.T
    ys = []
    u1 = u2 = 0.0
    for b in range(B):
        o2 = r2[b] * sc2 + sh2
        o3 = r3[b] * sc3 + sh3
        r2[b] = r3[b] = None
        if use_se:
            m2 = col_sum(o2) * inv_hw                    # (exp, 1) avg pool (MXU)
            m3 = col_sum(o3) * inv_hw
            h1 = jnp.maximum(
                jnp.sum(m2 * se_w1[:exp, :], axis=0, keepdims=True)
                + jnp.sum(m3 * se_w1[exp:, :], axis=0, keepdims=True), 0.0)  # (1,hid)
            yse = _hsigmoid(jnp.sum(h1 * se_w2t, axis=1, keepdims=True))     # (2exp,1)
            o2 = _hsigmoid(o2 * yse[:exp, :])            # FuseBlock's outer hsigmoid
            o3 = _hsigmoid(o3 * yse[exp:, :])
            # hsigmoid output is >= 0, so the module's ReLU is a no-op here.
        else:
            o2 = jnp.maximum(o2, 0.0)
            o3 = jnp.maximum(o3, 0.0)
        # conv2 over the implicit [out2 | out3] concat: two MXU dots, no concat
        y = mxu_dot(w2a, o2) + mxu_dot(w2b, o3)          # (Cout, HW)
        ys.append(y)
        u1 = u1 + col_sum(y)
        u2 = u2 + col_sum(y * y)
    sc4, sh4 = bn_fold(u1, u2, bn2_g, bn2_b)

    # ---- stage 4: bn2 apply + lane-dense (HW-wide) stores -------------------
    for b in range(B):
        o_ref[b] = ys[b] * sc4 + sh4


# ------------------------------- wrapper -----------------------------------

def fuse_block_forward(x_nchw, params, *, K, stride, squeeze_and_excite=True):
    assert stride == 1 and K % 2 == 1, "optimized kernel supports stride=1, odd K"
    pad = (K - 1) // 2
    B, Cin, H, W = x_nchw.shape
    HW = H * W
    exp = params["w1"].shape[0]
    Cout = params["w2"].shape[0]

    # FREE reshape (contiguous collapse of the minor dims) -- no transpose,
    # no extra HBM traffic around the kernel.
    x3 = x_nchw.reshape(B, Cin, HW).astype(jnp.float32)
    # tiny (1, HW) table of w coordinates (Mosaic lacks a vector integer mod);
    # h / b indices are not needed: the H-mask is a plain lane-iota compare.
    w_idx = (jnp.arange(HW, dtype=jnp.int32) % W).reshape(1, HW)

    kernel = functools.partial(fuseblock_kernel, K, pad,
                               bool(squeeze_and_excite), B, H, W)
    vmem = pl.BlockSpec(memory_space=pltpu.MemorySpace.VMEM)
    args = (x3, params["w1"], params["dw1"], params["dw2"],
            params["w2"][:, :exp], params["w2"][:, exp:],
            params["se_w1"], jnp.transpose(params["se_w2"]),
            w_idx,
            params["bn1_g"], params["bn1_b"],
            params["dwbn1_g"], params["dwbn1_b"],
            params["dwbn2_g"], params["dwbn2_b"],
            params["bn2_g"], params["bn2_b"])
    out = pl.pallas_call(
        kernel,
        out_shape=jax.ShapeDtypeStruct((B, Cout, HW), jnp.float32),
        in_specs=[vmem] * len(args),
        out_specs=vmem,
        # 32 MiB is safe on every generation for this regime; raise towards
        # ~96 MiB on v5e/v6e for bigger monolithic blocks (v7x needs the tiled
        # grid from the TODO above instead).
        compiler_params=pltpu.CompilerParams(vmem_limit_bytes=32 * 1024 * 1024),
    )(*args)
    return out.reshape(B, Cout, H, W)                    # free reshape -> NCHW


# ------------------------- deterministic parameters -------------------------

def init_params(key, *, K, exp, in_channels, out_channels, reduction=4):
    hid = (2 * exp) // reduction
    ks = jax.random.split(key, 14)
    n = jax.random.normal
    return {
        "w1":      n(ks[0], (exp, in_channels), jnp.float32) * 0.2,     # conv1 (1x1), (O, I)
        "dw1":     n(ks[1], (exp, K), jnp.float32) * 0.3,               # (1,K) depthwise taps
        "dw2":     n(ks[2], (exp, K), jnp.float32) * 0.3,               # (K,1) depthwise taps
        "w2":      n(ks[3], (out_channels, 2 * exp), jnp.float32) * 0.2,  # conv2 (1x1), (O, I)
        "se_w1":   n(ks[4], (2 * exp, hid), jnp.float32) * 0.3,         # SE fc1 (no bias)
        "se_w2":   n(ks[5], (hid, 2 * exp), jnp.float32) * 0.3,         # SE fc2 (no bias)
        "bn1_g":   1.0 + 0.1 * n(ks[6], (exp, 1), jnp.float32),
        "bn1_b":   0.1 * n(ks[7], (exp, 1), jnp.float32),
        "dwbn1_g": 1.0 + 0.1 * n(ks[8], (exp, 1), jnp.float32),
        "dwbn1_b": 0.1 * n(ks[9], (exp, 1), jnp.float32),
        "dwbn2_g": 1.0 + 0.1 * n(ks[10], (exp, 1), jnp.float32),
        "dwbn2_b": 0.1 * n(ks[11], (exp, 1), jnp.float32),
        "bn2_g":   1.0 + 0.1 * n(ks[12], (out_channels, 1), jnp.float32),
        "bn2_b":   0.1 * n(ks[13], (out_channels, 1), jnp.float32),
    }


# ----------------------- plain-JAX reference (NCHW) ------------------------

def fuse_block_reference(x_nchw, params, *, K, stride, squeeze_and_excite):
    pad = (K - 1) // 2

    def conv(x, w, stride=1, padding=((0, 0), (0, 0)), groups=1):
        return jax.lax.conv_general_dilated(
            x, w, window_strides=(stride, stride), padding=padding,
            dimension_numbers=("NCHW", "OIHW", "NCHW"),
            feature_group_count=groups, precision=_PREC)

    def bn(x, g, b):
        mean = jnp.mean(x, axis=(0, 2, 3), keepdims=True)
        var = jnp.mean((x - mean) ** 2, axis=(0, 2, 3), keepdims=True)
        return ((x - mean) * jax.lax.rsqrt(var + BN_EPS)
                * g.reshape(1, -1, 1, 1) + b.reshape(1, -1, 1, 1))

    relu = lambda v: jnp.maximum(v, 0.0)
    hsig = lambda v: jnp.clip(v + 3.0, 0.0, 6.0) / 6.0

    exp, Cin = params["w1"].shape
    Cout = params["w2"].shape[0]
    w1 = params["w1"].reshape(exp, Cin, 1, 1)
    dw1 = params["dw1"].reshape(exp, 1, 1, K)
    dw2 = params["dw2"].reshape(exp, 1, K, 1)
    w2 = params["w2"].reshape(Cout, 2 * exp, 1, 1)

    out1 = bn(relu(conv(x_nchw, w1)),
              params["bn1_g"].ravel(), params["bn1_b"].ravel())
    out2 = bn(conv(out1, dw1, stride=stride, padding=((0, 0), (pad, pad)), groups=exp),
              params["dwbn1_g"].ravel(), params["dwbn1_b"].ravel())
    out3 = bn(conv(out1, dw2, stride=stride, padding=((pad, pad), (0, 0)), groups=exp),
              params["dwbn2_g"].ravel(), params["dwbn2_b"].ravel())
    out = jnp.concatenate([out2, out3], axis=1)
    if squeeze_and_excite:
        y = jnp.mean(out, axis=(2, 3))
        y = relu(jnp.dot(y, params["se_w1"], precision=_PREC))
        y = hsig(jnp.dot(y, params["se_w2"], precision=_PREC))
        out = hsig(out * y[:, :, None, None])
    out = relu(out)
    out = bn(conv(out, w2), params["bn2_g"].ravel(), params["bn2_b"].ravel())
    return out


# --------------------------------- main -------------------------------------

if __name__ == "__main__":
    K, stride = 3, 1
    in_channels, exp, out_channels = 4, 8, 8
    B, H, W = 2, 16, 16

    key = jax.random.PRNGKey(0)
    kx, kp = jax.random.split(key)
    x = jax.random.normal(kx, (B, in_channels, H, W), jnp.float32)   # NCHW like PyTorch
    params = init_params(kp, K=K, exp=exp, in_channels=in_channels,
                         out_channels=out_channels)

    out = fuse_block_forward(x, params, K=K, stride=stride, squeeze_and_excite=True)
    out = jax.block_until_ready(out)

    ref = fuse_block_reference(x, params, K=K, stride=stride, squeeze_and_excite=True)
    assert out.shape == ref.shape, (out.shape, ref.shape)
    max_err = float(jnp.max(jnp.abs(out - ref)))
    assert jnp.allclose(out, ref, atol=2e-3, rtol=2e-3), max_err

    print("KERNEL_OK")
</pallas_src>

<mosaic_0001>
module attributes {stable_mosaic.version = 11 : i64} {
  func.func @fuseblock_kernel(%arg0: memref<2x4x256xf32, #tpu.memory_space<vmem>>, %arg1: memref<8x4xf32, #tpu.memory_space<vmem>>, %arg2: memref<8x3xf32, #tpu.memory_space<vmem>>, %arg3: memref<8x3xf32, #tpu.memory_space<vmem>>, %arg4: memref<8x8xf32, #tpu.memory_space<vmem>>, %arg5: memref<8x8xf32, #tpu.memory_space<vmem>>, %arg6: memref<16x4xf32, #tpu.memory_space<vmem>>, %arg7: memref<16x4xf32, #tpu.memory_space<vmem>>, %arg8: memref<1x256xi32, #tpu.memory_space<vmem>>, %arg9: memref<8x1xf32, #tpu.memory_space<vmem>>, %arg10: memref<8x1xf32, #tpu.memory_space<vmem>>, %arg11: memref<8x1xf32, #tpu.memory_space<vmem>>, %arg12: memref<8x1xf32, #tpu.memory_space<vmem>>, %arg13: memref<8x1xf32, #tpu.memory_space<vmem>>, %arg14: memref<8x1xf32, #tpu.memory_space<vmem>>, %arg15: memref<8x1xf32, #tpu.memory_space<vmem>>, %arg16: memref<8x1xf32, #tpu.memory_space<vmem>>, %arg17: memref<2x8x256xf32, #tpu.memory_space<vmem>>) attributes {dimension_semantics = [], scalar_prefetch = 0 : i64, scratch_operands = 0 : i64, tpu.core_type = #tpu.core_type<tc>} {
    %c0 = arith.constant 0 : index
    %c0_0 = arith.constant 0 : index
    %0 = vector.load %arg1[%c0, %c0_0] : memref<8x4xf32, #tpu.memory_space<vmem>>, vector<8x4xf32>
    %c0_1 = arith.constant 0 : index
    %c0_2 = arith.constant 0 : index
    %1 = vector.load %arg2[%c0_1, %c0_2] : memref<8x3xf32, #tpu.memory_space<vmem>>, vector<8x3xf32>
    %c0_3 = arith.constant 0 : index
    %c0_4 = arith.constant 0 : index
    %2 = vector.load %arg3[%c0_3, %c0_4] : memref<8x3xf32, #tpu.memory_space<vmem>>, vector<8x3xf32>
    %c0_5 = arith.constant 0 : index
    %c0_6 = arith.constant 0 : index
    %3 = vector.load %arg4[%c0_5, %c0_6] : memref<8x8xf32, #tpu.memory_space<vmem>>, vector<8x8xf32>
    %c0_7 = arith.constant 0 : index
    %c0_8 = arith.constant 0 : index
    %4 = vector.load %arg5[%c0_7, %c0_8] : memref<8x8xf32, #tpu.memory_space<vmem>>, vector<8x8xf32>
    %c0_9 = arith.constant 0 : index
    %c0_10 = arith.constant 0 : index
    %5 = vector.load %arg8[%c0_9, %c0_10] : memref<1x256xi32, #tpu.memory_space<vmem>>, vector<1x256xi32>
    %6 = tpu.iota {dimensions = array<i32: 1>} : vector<1x256xi32>
    %cst = arith.constant 1.000000e+00 : f32
    %7 = vector.broadcast %cst : f32 to vector<256x1xf32>
    %c1_i32 = arith.constant 1 : i32
    %8 = vector.broadcast %c1_i32 : i32 to vector<1x256xi32>
    %9 = arith.cmpi sge, %5, %8 : vector<1x256xi32>
    %c15_i32 = arith.constant 15 : i32
    %10 = vector.broadcast %c15_i32 : i32 to vector<1x256xi32>
    %11 = arith.cmpi slt, %5, %10 : vector<1x256xi32>
    %c16_i32 = arith.constant 16 : i32
    %12 = vector.broadcast %c16_i32 : i32 to vector<1x256xi32>
    %13 = arith.cmpi sge, %6, %12 : vector<1x256xi32>
    %c240_i32 = arith.constant 240 : i32
    %14 = vector.broadcast %c240_i32 : i32 to vector<1x256xi32>
    %15 = arith.cmpi slt, %6, %14 : vector<1x256xi32>
    %c0_11 = arith.constant 0 : index
    %c0_12 = arith.constant 0 : index
    %c0_13 = arith.constant 0 : index
    %16 = vector.load %arg0[%c0_11, %c0_12, %c0_13] : memref<2x4x256xf32, #tpu.memory_space<vmem>>, vector<1x4x256xf32>
    %17 = vector.shape_cast %16 : vector<1x4x256xf32> to vector<4x256xf32>
    %18 = vector.extract_strided_slice %0 {offsets = [0, 0], sizes = [8, 1], strides = [1, 1]} : vector<8x4xf32> to vector<8x1xf32>
    %19 = vector.extract_strided_slice %17 {offsets = [0, 0], sizes = [1, 256], strides = [1, 1]} : vector<4x256xf32> to vector<1x256xf32>
    %20 = vector.broadcast %18 : vector<8x1xf32> to vector<8x256xf32>
    %21 = vector.broadcast %19 : vector<1x256xf32> to vector<8x256xf32>
    %22 = arith.mulf %20, %21 : vector<8x256xf32>
    %23 = vector.extract_strided_slice %0 {offsets = [0, 1], sizes = [8, 1], strides = [1, 1]} : vector<8x4xf32> to vector<8x1xf32>
    %24 = vector.extract_strided_slice %17 {offsets = [1, 0], sizes = [1, 256], strides = [1, 1]} : vector<4x256xf32> to vector<1x256xf32>
    %25 = vector.broadcast %23 : vector<8x1xf32> to vector<8x256xf32>
    %26 = vector.broadcast %24 : vector<1x256xf32> to vector<8x256xf32>
    %27 = arith.mulf %25, %26 : vector<8x256xf32>
    %28 = arith.addf %22, %27 : vector<8x256xf32>
    %29 = vector.extract_strided_slice %0 {offsets = [0, 2], sizes = [8, 1], strides = [1, 1]} : vector<8x4xf32> to vector<8x1xf32>
    %30 = vector.extract_strided_slice %17 {offsets = [2, 0], sizes = [1, 256], strides = [1, 1]} : vector<4x256xf32> to vector<1x256xf32>
    %31 = vector.broadcast %29 : vector<8x1xf32> to vector<8x256xf32>
    %32 = vector.broadcast %30 : vector<1x256xf32> to vector<8x256xf32>
    %33 = arith.mulf %31, %32 : vector<8x256xf32>
    %34 = arith.addf %28, %33 : vector<8x256xf32>
    %35 = vector.extract_strided_slice %0 {offsets = [0, 3], sizes = [8, 1], strides = [1, 1]} : vector<8x4xf32> to vector<8x1xf32>
    %36 = vector.extract_strided_slice %17 {offsets = [3, 0], sizes = [1, 256], strides = [1, 1]} : vector<4x256xf32> to vector<1x256xf32>
    %37 = vector.broadcast %35 : vector<8x1xf32> to vector<8x256xf32>
    %38 = vector.broadcast %36 : vector<1x256xf32> to vector<8x256xf32>
    %39 = arith.mulf %37, %38 : vector<8x256xf32>
    %40 = arith.addf %34, %39 : vector<8x256xf32>
    %cst_14 = arith.constant 0.000000e+00 : f32
    %41 = vector.broadcast %cst_14 : f32 to vector<8x256xf32>
    %42 = arith.maximumf %40, %41 : vector<8x256xf32>
    %cst_15 = arith.constant dense<0.000000e+00> : vector<8x1xf32>
    %43 = tpu.matmul %42, %7, %cst_15 {dimension_numbers = #tpu.dot_dimension_numbers<[1], [0], [0], [1], [0, 0, 1, 1], [], []>} : vector<8x256xf32>, vector<256x1xf32>, vector<8x1xf32> -> vector<8x1xf32>
    %cst_16 = arith.constant 0.000000e+00 : f32
    %44 = vector.broadcast %cst_16 : f32 to vector<8x1xf32>
    %45 = arith.addf %44, %43 : vector<8x1xf32>
    %46 = arith.mulf %42, %42 : vector<8x256xf32>
    %cst_17 = arith.constant dense<0.000000e+00> : vector<8x1xf32>
    %47 = tpu.matmul %46, %7, %cst_17 {dimension_numbers = #tpu.dot_dimension_numbers<[1], [0], [0], [1], [0, 0, 1, 1], [], []>} : vector<8x256xf32>, vector<256x1xf32>, vector<8x1xf32> -> vector<8x1xf32>
    %cst_18 = arith.constant 0.000000e+00 : f32
    %48 = vector.broadcast %cst_18 : f32 to vector<8x1xf32>
    %49 = arith.addf %48, %47 : vector<8x1xf32>
    %c1 = arith.constant 1 : index
    %c0_19 = arith.constant 0 : index
    %c0_20 = arith.constant 0 : index
    %50 = vector.load %arg0[%c1, %c0_19, %c0_20] : memref<2x4x256xf32, #tpu.memory_space<vmem>>, vector<1x4x256xf32>
    %51 = vector.shape_cast %50 : vector<1x4x256xf32> to vector<4x256xf32>
    %52 = vector.extract_strided_slice %0 {offsets = [0, 0], sizes = [8, 1], strides = [1, 1]} : vector<8x4xf32> to vector<8x1xf32>
    %53 = vector.extract_strided_slice %51 {offsets = [0, 0], sizes = [1, 256], strides = [1, 1]} : vector<4x256xf32> to vector<1x256xf32>
    %54 = vector.broadcast %52 : vector<8x1xf32> to vector<8x256xf32>
    %55 = vector.broadcast %53 : vector<1x256xf32> to vector<8x256xf32>
    %56 = arith.mulf %54, %55 : vector<8x256xf32>
    %57 = vector.extract_strided_slice %0 {offsets = [0, 1], sizes = [8, 1], strides = [1, 1]} : vector<8x4xf32> to vector<8x1xf32>
    %58 = vector.extract_strided_slice %51 {offsets = [1, 0], sizes = [1, 256], strides = [1, 1]} : vector<4x256xf32> to vector<1x256xf32>
    %59 = vector.broadcast %57 : vector<8x1xf32> to vector<8x256xf32>
    %60 = vector.broadcast %58 : vector<1x256xf32> to vector<8x256xf32>
    %61 = arith.mulf %59, %60 : vector<8x256xf32>
    %62 = arith.addf %56, %61 : vector<8x256xf32>
    %63 = vector.extract_strided_slice %0 {offsets = [0, 2], sizes = [8, 1], strides = [1, 1]} : vector<8x4xf32> to vector<8x1xf32>
    %64 = vector.extract_strided_slice %51 {offsets = [2, 0], sizes = [1, 256], strides = [1, 1]} : vector<4x256xf32> to vector<1x256xf32>
    %65 = vector.broadcast %63 : vector<8x1xf32> to vector<8x256xf32>
    %66 = vector.broadcast %64 : vector<1x256xf32> to vector<8x256xf32>
    %67 = arith.mulf %65, %66 : vector<8x256xf32>
    %68 = arith.addf %62, %67 : vector<8x256xf32>
    %69 = vector.extract_strided_slice %0 {offsets = [0, 3], sizes = [8, 1], strides = [1, 1]} : vector<8x4xf32> to vector<8x1xf32>
    %70 = vector.extract_strided_slice %51 {offsets = [3, 0], sizes = [1, 256], strides = [1, 1]} : vector<4x256xf32> to vector<1x256xf32>
    %71 = vector.broadcast %69 : vector<8x1xf32> to vector<8x256xf32>
    %72 = vector.broadcast %70 : vector<1x256xf32> to vector<8x256xf32>
    %73 = arith.mulf %71, %72 : vector<8x256xf32>
    %74 = arith.addf %68, %73 : vector<8x256xf32>
    %cst_21 = arith.constant 0.000000e+00 : f32
    %75 = vector.broadcast %cst_21 : f32 to vector<8x256xf32>
    %76 = arith.maximumf %74, %75 : vector<8x256xf32>
    %cst_22 = arith.constant dense<0.000000e+00> : vector<8x1xf32>
    %77 = tpu.matmul %76, %7, %cst_22 {dimension_numbers = #tpu.dot_dimension_numbers<[1], [0], [0], [1], [0, 0, 1, 1], [], []>} : vector<8x256xf32>, vector<256x1xf32>, vector<8x1xf32> -> vector<8x1xf32>
    %78 = arith.addf %45, %77 : vector<8x1xf32>
    %79 = arith.mulf %76, %76 : vector<8x256xf32>
    %cst_23 = arith.constant dense<0.000000e+00> : vector<8x1xf32>
    %80 = tpu.matmul %79, %7, %cst_23 {dimension_numbers = #tpu.dot_dimension_numbers<[1], [0], [0], [1], [0, 0, 1, 1], [], []>} : vector<8x256xf32>, vector<256x1xf32>, vector<8x1xf32> -> vector<8x1xf32>
    %81 = arith.addf %49, %80 : vector<8x1xf32>
    %cst_24 = arith.constant 0.001953125 : f32
    %82 = vector.broadcast %cst_24 : f32 to vector<8x1xf32>
    %83 = arith.mulf %78, %82 : vector<8x1xf32>
    %cst_25 = arith.constant 0.001953125 : f32
    %84 = vector.broadcast %cst_25 : f32 to vector<8x1xf32>
    %85 = arith.mulf %81, %84 : vector<8x1xf32>
    %86 = arith.mulf %83, %83 : vector<8x1xf32>
    %87 = arith.subf %85, %86 : vector<8x1xf32>
    %cst_26 = arith.constant 0.000000e+00 : f32
    %88 = vector.broadcast %cst_26 : f32 to vector<8x1xf32>
    %89 = arith.maximumf %87, %88 : vector<8x1xf32>
    %c0_27 = arith.constant 0 : index
    %c0_28 = arith.constant 0 : index
    %90 = vector.load %arg9[%c0_27, %c0_28] : memref<8x1xf32, #tpu.memory_space<vmem>>, vector<8x1xf32>
    %cst_29 = arith.constant 9.99999974E-6 : f32
    %91 = vector.broadcast %cst_29 : f32 to vector<8x1xf32>
    %92 = arith.addf %89, %91 : vector<8x1xf32>
    %93 = math.rsqrt %92 : vector<8x1xf32>
    %94 = arith.mulf %90, %93 : vector<8x1xf32>
    %c0_30 = arith.constant 0 : index
    %c0_31 = arith.constant 0 : index
    %95 = vector.load %arg10[%c0_30, %c0_31] : memref<8x1xf32, #tpu.memory_space<vmem>>, vector<8x1xf32>
    %96 = arith.mulf %83, %94 : vector<8x1xf32>
    %97 = arith.subf %95, %96 : vector<8x1xf32>
    %98 = vector.broadcast %94 : vector<8x1xf32> to vector<8x256xf32>
    %99 = arith.mulf %42, %98 : vector<8x256xf32>
    %100 = vector.broadcast %97 : vector<8x1xf32> to vector<8x256xf32>
    %101 = arith.addf %99, %100 : vector<8x256xf32>
    %102 = vector.extract_strided_slice %1 {offsets = [0, 1], sizes = [8, 1], strides = [1, 1]} : vector<8x3xf32> to vector<8x1xf32>
    %103 = vector.broadcast %102 : vector<8x1xf32> to vector<8x256xf32>
    %104 = arith.mulf %101, %103 : vector<8x256xf32>
    %c1_i32_32 = arith.constant 1 : i32
    %105 = tpu.dynamic_rotate %101 by %c1_i32_32 dim 1 : vector<8x256xf32>, i32 -> vector<8x256xf32>
    %cst_33 = arith.constant 0.000000e+00 : f32
    %106 = vector.shape_cast %9 : vector<1x256xi1> to vector<1x256xi1>
    %107 = vector.broadcast %106 : vector<1x256xi1> to vector<8x256xi1>
    %108 = vector.broadcast %cst_33 : f32 to vector<8x256xf32>
    %109 = arith.select %107, %105, %108 : vector<8x256xi1>, vector<8x256xf32>
    %110 = vector.extract_strided_slice %1 {offsets = [0, 0], sizes = [8, 1], strides = [1, 1]} : vector<8x3xf32> to vector<8x1xf32>
    %111 = vector.broadcast %110 : vector<8x1xf32> to vector<8x256xf32>
    %112 = arith.mulf %109, %111 : vector<8x256xf32>
    %113 = arith.addf %104, %112 : vector<8x256xf32>
    %c255_i32 = arith.constant 255 : i32
    %114 = tpu.dynamic_rotate %101 by %c255_i32 dim 1 : vector<8x256xf32>, i32 -> vector<8x256xf32>
    %cst_34 = arith.constant 0.000000e+00 : f32
    %115 = vector.shape_cast %11 : vector<1x256xi1> to vector<1x256xi1>
    %116 = vector.broadcast %115 : vector<1x256xi1> to vector<8x256xi1>
    %117 = vector.broadcast %cst_34 : f32 to vector<8x256xf32>
    %118 = arith.select %116, %114, %117 : vector<8x256xi1>, vector<8x256xf32>
    %119 = vector.extract_strided_slice %1 {offsets = [0, 2], sizes = [8, 1], strides = [1, 1]} : vector<8x3xf32> to vector<8x1xf32>
    %120 = vector.broadcast %119 : vector<8x1xf32> to vector<8x256xf32>
    %121 = arith.mulf %118, %120 : vector<8x256xf32>
    %122 = arith.addf %113, %121 : vector<8x256xf32>
    %123 = vector.extract_strided_slice %2 {offsets = [0, 1], sizes = [8, 1], strides = [1, 1]} : vector<8x3xf32> to vector<8x1xf32>
    %124 = vector.broadcast %123 : vector<8x1xf32> to vector<8x256xf32>
    %125 = arith.mulf %101, %124 : vector<8x256xf32>
    %c16_i32_35 = arith.constant 16 : i32
    %126 = tpu.dynamic_rotate %101 by %c16_i32_35 dim 1 : vector<8x256xf32>, i32 -> vector<8x256xf32>
    %cst_36 = arith.constant 0.000000e+00 : f32
    %127 = vector.shape_cast %13 : vector<1x256xi1> to vector<1x256xi1>
    %128 = vector.broadcast %127 : vector<1x256xi1> to vector<8x256xi1>
    %129 = vector.broadcast %cst_36 : f32 to vector<8x256xf32>
    %130 = arith.select %128, %126, %129 : vector<8x256xi1>, vector<8x256xf32>
    %131 = vector.extract_strided_slice %2 {offsets = [0, 0], sizes = [8, 1], strides = [1, 1]} : vector<8x3xf32> to vector<8x1xf32>
    %132 = vector.broadcast %131 : vector<8x1xf32> to vector<8x256xf32>
    %133 = arith.mulf %130, %132 : vector<8x256xf32>
    %134 = arith.addf %125, %133 : vector<8x256xf32>
    %c240_i32_37 = arith.constant 240 : i32
    %135 = tpu.dynamic_rotate %101 by %c240_i32_37 dim 1 : vector<8x256xf32>, i32 -> vector<8x256xf32>
    %cst_38 = arith.constant 0.000000e+00 : f32
    %136 = vector.shape_cast %15 : vector<1x256xi1> to vector<1x256xi1>
    %137 = vector.broadcast %136 : vector<1x256xi1> to vector<8x256xi1>
    %138 = vector.broadcast %cst_38 : f32 to vector<8x256xf32>
    %139 = arith.select %137, %135, %138 : vector<8x256xi1>, vector<8x256xf32>
    %140 = vector.extract_strided_slice %2 {offsets = [0, 2], sizes = [8, 1], strides = [1, 1]} : vector<8x3xf32> to vector<8x1xf32>
    %141 = vector.broadcast %140 : vector<8x1xf32> to vector<8x256xf32>
    %142 = arith.mulf %139, %141 : vector<8x256xf32>
    %143 = arith.addf %134, %142 : vector<8x256xf32>
    %cst_39 = arith.constant dense<0.000000e+00> : vector<8x1xf32>
    %144 = tpu.matmul %122, %7, %cst_39 {dimension_numbers = #tpu.dot_dimension_numbers<[1], [0], [0], [1], [0, 0, 1, 1], [], []>} : vector<8x256xf32>, vector<256x1xf32>, vector<8x1xf32> -> vector<8x1xf32>
    %cst_40 = arith.constant 0.000000e+00 : f32
    %145 = vector.broadcast %cst_40 : f32 to vector<8x1xf32>
    %146 = arith.addf %145, %144 : vector<8x1xf32>
    %147 = arith.mulf %122, %122 : vector<8x256xf32>
    %cst_41 = arith.constant dense<0.000000e+00> : vector<8x1xf32>
    %148 = tpu.matmul %147, %7, %cst_41 {dimension_numbers = #tpu.dot_dimension_numbers<[1], [0], [0], [1], [0, 0, 1, 1], [], []>} : vector<8x256xf32>, vector<256x1xf32>, vector<8x1xf32> -> vector<8x1xf32>
    %cst_42 = arith.constant 0.000000e+00 : f32
    %149 = vector.broadcast %cst_42 : f32 to vector<8x1xf32>
    %150 = arith.addf %149, %148 : vector<8x1xf32>
    %cst_43 = arith.constant dense<0.000000e+00> : vector<8x1xf32>
    %151 = tpu.matmul %143, %7, %cst_43 {dimension_numbers = #tpu.dot_dimension_numbers<[1], [0], [0], [1], [0, 0, 1, 1], [], []>} : vector<8x256xf32>, vector<256x1xf32>, vector<8x1xf32> -> vector<8x1xf32>
    %cst_44 = arith.constant 0.000000e+00 : f32
    %152 = vector.broadcast %cst_44 : f32 to vector<8x1xf32>
    %153 = arith.addf %152, %151 : vector<8x1xf32>
    %154 = arith.mulf %143, %143 : vector<8x256xf32>
    %cst_45 = arith.constant dense<0.000000e+00> : vector<8x1xf32>
    %155 = tpu.matmul %154, %7, %cst_45 {dimension_numbers = #tpu.dot_dimension_numbers<[1], [0], [0], [1], [0, 0, 1, 1], [], []>} : vector<8x256xf32>, vector<256x1xf32>, vector<8x1xf32> -> vector<8x1xf32>
    %cst_46 = arith.constant 0.000000e+00 : f32
    %156 = vector.broadcast %cst_46 : f32 to vector<8x1xf32>
    %157 = arith.addf %156, %155 : vector<8x1xf32>
    %158 = vector.broadcast %94 : vector<8x1xf32> to vector<8x256xf32>
    %159 = arith.mulf %76, %158 : vector<8x256xf32>
    %160 = vector.broadcast %97 : vector<8x1xf32> to vector<8x256xf32>
    %161 = arith.addf %159, %160 : vector<8x256xf32>
    %162 = vector.extract_strided_slice %1 {offsets = [0, 1], sizes = [8, 1], strides = [1, 1]} : vector<8x3xf32> to vector<8x1xf32>
    %163 = vector.broadcast %162 : vector<8x1xf32> to vector<8x256xf32>
    %164 = arith.mulf %161, %163 : vector<8x256xf32>
    %c1_i32_47 = arith.constant 1 : i32
    %165 = tpu.dynamic_rotate %161 by %c1_i32_47 dim 1 : vector<8x256xf32>, i32 -> vector<8x256xf32>
    %cst_48 = arith.constant 0.000000e+00 : f32
    %166 = vector.shape_cast %9 : vector<1x256xi1> to vector<1x256xi1>
    %167 = vector.broadcast %166 : vector<1x256xi1> to vector<8x256xi1>
    %168 = vector.broadcast %cst_48 : f32 to vector<8x256xf32>
    %169 = arith.select %167, %165, %168 : vector<8x256xi1>, vector<8x256xf32>
    %170 = vector.extract_strided_slice %1 {offsets = [0, 0], sizes = [8, 1], strides = [1, 1]} : vector<8x3xf32> to vector<8x1xf32>
    %171 = vector.broadcast %170 : vector<8x1xf32> to vector<8x256xf32>
    %172 = arith.mulf %169, %171 : vector<8x256xf32>
    %173 = arith.addf %164, %172 : vector<8x256xf32>
    %c255_i32_49 = arith.constant 255 : i32
    %174 = tpu.dynamic_rotate %161 by %c255_i32_49 dim 1 : vector<8x256xf32>, i32 -> vector<8x256xf32>
    %cst_50 = arith.constant 0.000000e+00 : f32
    %175 = vector.shape_cast %11 : vector<1x256xi1> to vector<1x256xi1>
    %176 = vector.broadcast %175 : vector<1x256xi1> to vector<8x256xi1>
    %177 = vector.broadcast %cst_50 : f32 to vector<8x256xf32>
    %178 = arith.select %176, %174, %177 : vector<8x256xi1>, vector<8x256xf32>
    %179 = vector.extract_strided_slice %1 {offsets = [0, 2], sizes = [8, 1], strides = [1, 1]} : vector<8x3xf32> to vector<8x1xf32>
    %180 = vector.broadcast %179 : vector<8x1xf32> to vector<8x256xf32>
    %181 = arith.mulf %178, %180 : vector<8x256xf32>
    %182 = arith.addf %173, %181 : vector<8x256xf32>
    %183 = vector.extract_strided_slice %2 {offsets = [0, 1], sizes = [8, 1], strides = [1, 1]} : vector<8x3xf32> to vector<8x1xf32>
    %184 = vector.broadcast %183 : vector<8x1xf32> to vector<8x256xf32>
    %185 = arith.mulf %161, %184 : vector<8x256xf32>
    %c16_i32_51 = arith.constant 16 : i32
    %186 = tpu.dynamic_rotate %161 by %c16_i32_51 dim 1 : vector<8x256xf32>, i32 -> vector<8x256xf32>
    %cst_52 = arith.constant 0.000000e+00 : f32
    %187 = vector.shape_cast %13 : vector<1x256xi1> to vector<1x256xi1>
    %188 = vector.broadcast %187 : vector<1x256xi1> to vector<8x256xi1>
    %189 = vector.broadcast %cst_52 : f32 to vector<8x256xf32>
    %190 = arith.select %188, %186, %189 : vector<8x256xi1>, vector<8x256xf32>
    %191 = vector.extract_strided_slice %2 {offsets = [0, 0], sizes = [8, 1], strides = [1, 1]} : vector<8x3xf32> to vector<8x1xf32>
    %192 = vector.broadcast %191 : vector<8x1xf32> to vector<8x256xf32>
    %193 = arith.mulf %190, %192 : vector<8x256xf32>
    %194 = arith.addf %185, %193 : vector<8x256xf32>
    %c240_i32_53 = arith.constant 240 : i32
    %195 = tpu.dynamic_rotate %161 by %c240_i32_53 dim 1 : vector<8x256xf32>, i32 -> vector<8x256xf32>
    %cst_54 = arith.constant 0.000000e+00 : f32
    %196 = vector.shape_cast %15 : vector<1x256xi1> to vector<1x256xi1>
    %197 = vector.broadcast %196 : vector<1x256xi1> to vector<8x256xi1>
    %198 = vector.broadcast %cst_54 : f32 to vector<8x256xf32>
    %199 = arith.select %197, %195, %198 : vector<8x256xi1>, vector<8x256xf32>
    %200 = vector.extract_strided_slice %2 {offsets = [0, 2], sizes = [8, 1], strides = [1, 1]} : vector<8x3xf32> to vector<8x1xf32>
    %201 = vector.broadcast %200 : vector<8x1xf32> to vector<8x256xf32>
    %202 = arith.mulf %199, %201 : vector<8x256xf32>
    %203 = arith.addf %194, %202 : vector<8x256xf32>
    %cst_55 = arith.constant dense<0.000000e+00> : vector<8x1xf32>
    %204 = tpu.matmul %182, %7, %cst_55 {dimension_numbers = #tpu.dot_dimension_numbers<[1], [0], [0], [1], [0, 0, 1, 1], [], []>} : vector<8x256xf32>, vector<256x1xf32>, vector<8x1xf32> -> vector<8x1xf32>
    %205 = arith.addf %146, %204 : vector<8x1xf32>
    %206 = arith.mulf %182, %182 : vector<8x256xf32>
    %cst_56 = arith.constant dense<0.000000e+00> : vector<8x1xf32>
    %207 = tpu.matmul %206, %7, %cst_56 {dimension_numbers = #tpu.dot_dimension_numbers<[1], [0], [0], [1], [0, 0, 1, 1], [], []>} : vector<8x256xf32>, vector<256x1xf32>, vector<8x1xf32> -> vector<8x1xf32>
    %208 = arith.addf %150, %207 : vector<8x1xf32>
    %cst_57 = arith.constant dense<0.000000e+00> : vector<8x1xf32>
    %209 = tpu.matmul %203, %7, %cst_57 {dimension_numbers = #tpu.dot_dimension_numbers<[1], [0], [0], [1], [0, 0, 1, 1], [], []>} : vector<8x256xf32>, vector<256x1xf32>, vector<8x1xf32> -> vector<8x1xf32>
    %210 = arith.addf %153, %209 : vector<8x1xf32>
    %211 = arith.mulf %203, %203 : vector<8x256xf32>
    %cst_58 = arith.constant dense<0.000000e+00> : vector<8x1xf32>
    %212 = tpu.matmul %211, %7, %cst_58 {dimension_numbers = #tpu.dot_dimension_numbers<[1], [0], [0], [1], [0, 0, 1, 1], [], []>} : vector<8x256xf32>, vector<256x1xf32>, vector<8x1xf32> -> vector<8x1xf32>
    %213 = arith.addf %157, %212 : vector<8x1xf32>
    %cst_59 = arith.constant 0.001953125 : f32
    %214 = vector.broadcast %cst_59 : f32 to vector<8x1xf32>
    %215 = arith.mulf %205, %214 : vector<8x1xf32>
    %cst_60 = arith.constant 0.001953125 : f32
    %216 = vector.broadcast %cst_60 : f32 to vector<8x1xf32>
    %217 = arith.mulf %208, %216 : vector<8x1xf32>
    %218 = arith.mulf %215, %215 : vector<8x1xf32>
    %219 = arith.subf %217, %218 : vector<8x1xf32>
    %cst_61 = arith.constant 0.000000e+00 : f32
    %220 = vector.broadcast %cst_61 : f32 to vector<8x1xf32>
    %221 = arith.maximumf %219, %220 : vector<8x1xf32>
    %c0_62 = arith.constant 0 : index
    %c0_63 = arith.constant 0 : index
    %222 = vector.load %arg11[%c0_62, %c0_63] : memref<8x1xf32, #tpu.memory_space<vmem>>, vector<8x1xf32>
    %cst_64 = arith.constant 9.99999974E-6 : f32
    %223 = vector.broadcast %cst_64 : f32 to vector<8x1xf32>
    %224 = arith.addf %221, %223 : vector<8x1xf32>
    %225 = math.rsqrt %224 : vector<8x1xf32>
    %226 = arith.mulf %222, %225 : vector<8x1xf32>
    %c0_65 = arith.constant 0 : index
    %c0_66 = arith.constant 0 : index
    %227 = vector.load %arg12[%c0_65, %c0_66] : memref<8x1xf32, #tpu.memory_space<vmem>>, vector<8x1xf32>
    %228 = arith.mulf %215, %226 : vector<8x1xf32>
    %229 = arith.subf %227, %228 : vector<8x1xf32>
    %cst_67 = arith.constant 0.001953125 : f32
    %230 = vector.broadcast %cst_67 : f32 to vector<8x1xf32>
    %231 = arith.mulf %210, %230 : vector<8x1xf32>
    %cst_68 = arith.constant 0.001953125 : f32
    %232 = vector.broadcast %cst_68 : f32 to vector<8x1xf32>
    %233 = arith.mulf %213, %232 : vector<8x1xf32>
    %234 = arith.mulf %231, %231 : vector<8x1xf32>
    %235 = arith.subf %233, %234 : vector<8x1xf32>
    %cst_69 = arith.constant 0.000000e+00 : f32
    %236 = vector.broadcast %cst_69 : f32 to vector<8x1xf32>
    %237 = arith.maximumf %235, %236 : vector<8x1xf32>
    %c0_70 = arith.constant 0 : index
    %c0_71 = arith.constant 0 : index
    %238 = vector.load %arg13[%c0_70, %c0_71] : memref<8x1xf32, #tpu.memory_space<vmem>>, vector<8x1xf32>
    %cst_72 = arith.constant 9.99999974E-6 : f32
    %239 = vector.broadcast %cst_72 : f32 to vector<8x1xf32>
    %240 = arith.addf %237, %239 : vector<8x1xf32>
    %241 = math.rsqrt %240 : vector<8x1xf32>
    %242 = arith.mulf %238, %241 : vector<8x1xf32>
    %c0_73 = arith.constant 0 : index
    %c0_74 = arith.constant 0 : index
    %243 = vector.load %arg14[%c0_73, %c0_74] : memref<8x1xf32, #tpu.memory_space<vmem>>, vector<8x1xf32>
    %244 = arith.mulf %231, %242 : vector<8x1xf32>
    %245 = arith.subf %243, %244 : vector<8x1xf32>
    %c0_75 = arith.constant 0 : index
    %c0_76 = arith.constant 0 : index
    %246 = vector.load %arg6[%c0_75, %c0_76] : memref<16x4xf32, #tpu.memory_space<vmem>>, vector<16x4xf32>
    %c0_77 = arith.constant 0 : index
    %c0_78 = arith.constant 0 : index
    %247 = vector.load %arg7[%c0_77, %c0_78] : memref<16x4xf32, #tpu.memory_space<vmem>>, vector<16x4xf32>
    %248 = vector.broadcast %226 : vector<8x1xf32> to vector<8x256xf32>
    %249 = arith.mulf %122, %248 : vector<8x256xf32>
    %250 = vector.broadcast %229 : vector<8x1xf32> to vector<8x256xf32>
    %251 = arith.addf %249, %250 : vector<8x256xf32>
    %252 = vector.broadcast %242 : vector<8x1xf32> to vector<8x256xf32>
    %253 = arith.mulf %143, %252 : vector<8x256xf32>
    %254 = vector.broadcast %245 : vector<8x1xf32> to vector<8x256xf32>
    %255 = arith.addf %253, %254 : vector<8x256xf32>
    %cst_79 = arith.constant dense<0.000000e+00> : vector<8x1xf32>
    %256 = tpu.matmul %251, %7, %cst_79 {dimension_numbers = #tpu.dot_dimension_numbers<[1], [0], [0], [1], [0, 0, 1, 1], [], []>} : vector<8x256xf32>, vector<256x1xf32>, vector<8x1xf32> -> vector<8x1xf32>
    %cst_80 = arith.constant 3.906250e-03 : f32
    %257 = vector.broadcast %cst_80 : f32 to vector<8x1xf32>
    %258 = arith.mulf %256, %257 : vector<8x1xf32>
    %cst_81 = arith.constant dense<0.000000e+00> : vector<8x1xf32>
    %259 = tpu.matmul %255, %7, %cst_81 {dimension_numbers = #tpu.dot_dimension_numbers<[1], [0], [0], [1], [0, 0, 1, 1], [], []>} : vector<8x256xf32>, vector<256x1xf32>, vector<8x1xf32> -> vector<8x1xf32>
    %cst_82 = arith.constant 3.906250e-03 : f32
    %260 = vector.broadcast %cst_82 : f32 to vector<8x1xf32>
    %261 = arith.mulf %259, %260 : vector<8x1xf32>
    %262 = vector.extract_strided_slice %246 {offsets = [0, 0], sizes = [8, 4], strides = [1, 1]} : vector<16x4xf32> to vector<8x4xf32>
    %263 = vector.broadcast %258 : vector<8x1xf32> to vector<8x4xf32>
    %264 = arith.mulf %263, %262 : vector<8x4xf32>
    %cst_83 = arith.constant dense<0.000000e+00> : vector<4xf32>
    %265 = vector.multi_reduction <add>, %264, %cst_83 [0] : vector<8x4xf32> to vector<4xf32>
    %266 = vector.shape_cast %265 : vector<4xf32> to vector<1x4xf32>
    %267 = vector.extract_strided_slice %246 {offsets = [8, 0], sizes = [8, 4], strides = [1, 1]} : vector<16x4xf32> to vector<8x4xf32>
    %268 = vector.broadcast %261 : vector<8x1xf32> to vector<8x4xf32>
    %269 = arith.mulf %268, %267 : vector<8x4xf32>
    %cst_84 = arith.constant dense<0.000000e+00> : vector<4xf32>
    %270 = vector.multi_reduction <add>, %269, %cst_84 [0] : vector<8x4xf32> to vector<4xf32>
    %271 = vector.shape_cast %270 : vector<4xf32> to vector<1x4xf32>
    %272 = arith.addf %266, %271 : vector<1x4xf32>
    %cst_85 = arith.constant 0.000000e+00 : f32
    %273 = vector.broadcast %cst_85 : f32 to vector<1x4xf32>
    %274 = arith.maximumf %272, %273 : vector<1x4xf32>
    %275 = vector.broadcast %274 : vector<1x4xf32> to vector<16x4xf32>
    %276 = arith.mulf %275, %247 : vector<16x4xf32>
    %cst_86 = arith.constant dense<0.000000e+00> : vector<16xf32>
    %277 = vector.multi_reduction <add>, %276, %cst_86 [1] : vector<16x4xf32> to vector<16xf32>
    %278 = vector.shape_cast %277 : vector<16xf32> to vector<16x1xf32>
    %cst_87 = arith.constant 3.000000e+00 : f32
    %279 = vector.broadcast %cst_87 : f32 to vector<16x1xf32>
    %280 = arith.addf %278, %279 : vector<16x1xf32>
    %cst_88 = arith.constant 0.000000e+00 : f32
    %cst_89 = arith.constant 6.000000e+00 : f32
    %281 = vector.broadcast %cst_88 : f32 to vector<16x1xf32>
    %282 = arith.maximumf %281, %280 : vector<16x1xf32>
    %283 = vector.broadcast %cst_89 : f32 to vector<16x1xf32>
    %284 = arith.minimumf %283, %282 : vector<16x1xf32>
    %cst_90 = arith.constant 0.166666672 : f32
    %285 = vector.broadcast %cst_90 : f32 to vector<16x1xf32>
    %286 = arith.mulf %284, %285 : vector<16x1xf32>
    %287 = vector.extract_strided_slice %286 {offsets = [0, 0], sizes = [8, 1], strides = [1, 1]} : vector<16x1xf32> to vector<8x1xf32>
    %288 = vector.broadcast %287 : vector<8x1xf32> to vector<8x256xf32>
    %289 = arith.mulf %251, %288 : vector<8x256xf32>
    %cst_91 = arith.constant 3.000000e+00 : f32
    %290 = vector.broadcast %cst_91 : f32 to vector<8x256xf32>
    %291 = arith.addf %289, %290 : vector<8x256xf32>
    %cst_92 = arith.constant 0.000000e+00 : f32
    %cst_93 = arith.constant 6.000000e+00 : f32
    %292 = vector.broadcast %cst_92 : f32 to vector<8x256xf32>
    %293 = arith.maximumf %292, %291 : vector<8x256xf32>
    %294 = vector.broadcast %cst_93 : f32 to vector<8x256xf32>
    %295 = arith.minimumf %294, %293 : vector<8x256xf32>
    %cst_94 = arith.constant 0.166666672 : f32
    %296 = vector.broadcast %cst_94 : f32 to vector<8x256xf32>
    %297 = arith.mulf %295, %296 : vector<8x256xf32>
    %298 = vector.extract_strided_slice %286 {offsets = [8, 0], sizes = [8, 1], strides = [1, 1]} : vector<16x1xf32> to vector<8x1xf32>
    %299 = vector.broadcast %298 : vector<8x1xf32> to vector<8x256xf32>
    %300 = arith.mulf %255, %299 : vector<8x256xf32>
    %cst_95 = arith.constant 3.000000e+00 : f32
    %301 = vector.broadcast %cst_95 : f32 to vector<8x256xf32>
    %302 = arith.addf %300, %301 : vector<8x256xf32>
    %cst_96 = arith.constant 0.000000e+00 : f32
    %cst_97 = arith.constant 6.000000e+00 : f32
    %303 = vector.broadcast %cst_96 : f32 to vector<8x256xf32>
    %304 = arith.maximumf %303, %302 : vector<8x256xf32>
    %305 = vector.broadcast %cst_97 : f32 to vector<8x256xf32>
    %306 = arith.minimumf %305, %304 : vector<8x256xf32>
    %cst_98 = arith.constant 0.166666672 : f32
    %307 = vector.broadcast %cst_98 : f32 to vector<8x256xf32>
    %308 = arith.mulf %306, %307 : vector<8x256xf32>
    %cst_99 = arith.constant dense<0.000000e+00> : vector<8x256xf32>
    %309 = tpu.matmul %3, %297, %cst_99 {dimension_numbers = #tpu.dot_dimension_numbers<[1], [0], [0], [1], [0, 0, 1, 1], [], []>} : vector<8x8xf32>, vector<8x256xf32>, vector<8x256xf32> -> vector<8x256xf32>
    %cst_100 = arith.constant dense<0.000000e+00> : vector<8x256xf32>
    %310 = tpu.matmul %4, %308, %cst_100 {dimension_numbers = #tpu.dot_dimension_numbers<[1], [0], [0], [1], [0, 0, 1, 1], [], []>} : vector<8x8xf32>, vector<8x256xf32>, vector<8x256xf32> -> vector<8x256xf32>
    %311 = arith.addf %309, %310 : vector<8x256xf32>
    %cst_101 = arith.constant dense<0.000000e+00> : vector<8x1xf32>
    %312 = tpu.matmul %311, %7, %cst_101 {dimension_numbers = #tpu.dot_dimension_numbers<[1], [0], [0], [1], [0, 0, 1, 1], [], []>} : vector<8x256xf32>, vector<256x1xf32>, vector<8x1xf32> -> vector<8x1xf32>
    %cst_102 = arith.constant 0.000000e+00 : f32
    %313 = vector.broadcast %cst_102 : f32 to vector<8x1xf32>
    %314 = arith.addf %313, %312 : vector<8x1xf32>
    %315 = arith.mulf %311, %311 : vector<8x256xf32>
    %cst_103 = arith.constant dense<0.000000e+00> : vector<8x1xf32>
    %316 = tpu.matmul %315, %7, %cst_103 {dimension_numbers = #tpu.dot_dimension_numbers<[1], [0], [0], [1], [0, 0, 1, 1], [], []>} : vector<8x256xf32>, vector<256x1xf32>, vector<8x1xf32> -> vector<8x1xf32>
    %cst_104 = arith.constant 0.000000e+00 : f32
    %317 = vector.broadcast %cst_104 : f32 to vector<8x1xf32>
    %318 = arith.addf %317, %316 : vector<8x1xf32>
    %319 = vector.broadcast %226 : vector<8x1xf32> to vector<8x256xf32>
    %320 = arith.mulf %182, %319 : vector<8x256xf32>
    %321 = vector.broadcast %229 : vector<8x1xf32> to vector<8x256xf32>
    %322 = arith.addf %320, %321 : vector<8x256xf32>
    %323 = vector.broadcast %242 : vector<8x1xf32> to vector<8x256xf32>
    %324 = arith.mulf %203, %323 : vector<8x256xf32>
    %325 = vector.broadcast %245 : vector<8x1xf32> to vector<8x256xf32>
    %326 = arith.addf %324, %325 : vector<8x256xf32>
    %cst_105 = arith.constant dense<0.000000e+00> : vector<8x1xf32>
    %327 = tpu.matmul %322, %7, %cst_105 {dimension_numbers = #tpu.dot_dimension_numbers<[1], [0], [0], [1], [0, 0, 1, 1], [], []>} : vector<8x256xf32>, vector<256x1xf32>, vector<8x1xf32> -> vector<8x1xf32>
    %cst_106 = arith.constant 3.906250e-03 : f32
    %328 = vector.broadcast %cst_106 : f32 to vector<8x1xf32>
    %329 = arith.mulf %327, %328 : vector<8x1xf32>
    %cst_107 = arith.constant dense<0.000000e+00> : vector<8x1xf32>
    %330 = tpu.matmul %326, %7, %cst_107 {dimension_numbers = #tpu.dot_dimension_numbers<[1], [0], [0], [1], [0, 0, 1, 1], [], []>} : vector<8x256xf32>, vector<256x1xf32>, vector<8x1xf32> -> vector<8x1xf32>
    %cst_108 = arith.constant 3.906250e-03 : f32
    %331 = vector.broadcast %cst_108 : f32 to vector<8x1xf32>
    %332 = arith.mulf %330, %331 : vector<8x1xf32>
    %333 = vector.extract_strided_slice %246 {offsets = [0, 0], sizes = [8, 4], strides = [1, 1]} : vector<16x4xf32> to vector<8x4xf32>
    %334 = vector.broadcast %329 : vector<8x1xf32> to vector<8x4xf32>
    %335 = arith.mulf %334, %333 : vector<8x4xf32>
    %cst_109 = arith.constant dense<0.000000e+00> : vector<4xf32>
    %336 = vector.multi_reduction <add>, %335, %cst_109 [0] : vector<8x4xf32> to vector<4xf32>
    %337 = vector.shape_cast %336 : vector<4xf32> to vector<1x4xf32>
    %338 = vector.extract_strided_slice %246 {offsets = [8, 0], sizes = [8, 4], strides = [1, 1]} : vector<16x4xf32> to vector<8x4xf32>
    %339 = vector.broadcast %332 : vector<8x1xf32> to vector<8x4xf32>
    %340 = arith.mulf %339, %338 : vector<8x4xf32>
    %cst_110 = arith.constant dense<0.000000e+00> : vector<4xf32>
    %341 = vector.multi_reduction <add>, %340, %cst_110 [0] : vector<8x4xf32> to vector<4xf32>
    %342 = vector.shape_cast %341 : vector<4xf32> to vector<1x4xf32>
    %343 = arith.addf %337, %342 : vector<1x4xf32>
    %cst_111 = arith.constant 0.000000e+00 : f32
    %344 = vector.broadcast %cst_111 : f32 to vector<1x4xf32>
    %345 = arith.maximumf %343, %344 : vector<1x4xf32>
    %346 = vector.broadcast %345 : vector<1x4xf32> to vector<16x4xf32>
    %347 = arith.mulf %346, %247 : vector<16x4xf32>
    %cst_112 = arith.constant dense<0.000000e+00> : vector<16xf32>
    %348 = vector.multi_reduction <add>, %347, %cst_112 [1] : vector<16x4xf32> to vector<16xf32>
    %349 = vector.shape_cast %348 : vector<16xf32> to vector<16x1xf32>
    %cst_113 = arith.constant 3.000000e+00 : f32
    %350 = vector.broadcast %cst_113 : f32 to vector<16x1xf32>
    %351 = arith.addf %349, %350 : vector<16x1xf32>
    %cst_114 = arith.constant 0.000000e+00 : f32
    %cst_115 = arith.constant 6.000000e+00 : f32
    %352 = vector.broadcast %cst_114 : f32 to vector<16x1xf32>
    %353 = arith.maximumf %352, %351 : vector<16x1xf32>
    %354 = vector.broadcast %cst_115 : f32 to vector<16x1xf32>
    %355 = arith.minimumf %354, %353 : vector<16x1xf32>
    %cst_116 = arith.constant 0.166666672 : f32
    %356 = vector.broadcast %cst_116 : f32 to vector<16x1xf32>
    %357 = arith.mulf %355, %356 : vector<16x1xf32>
    %358 = vector.extract_strided_slice %357 {offsets = [0, 0], sizes = [8, 1], strides = [1, 1]} : vector<16x1xf32> to vector<8x1xf32>
    %359 = vector.broadcast %358 : vector<8x1xf32> to vector<8x256xf32>
    %360 = arith.mulf %322, %359 : vector<8x256xf32>
    %cst_117 = arith.constant 3.000000e+00 : f32
    %361 = vector.broadcast %cst_117 : f32 to vector<8x256xf32>
    %362 = arith.addf %360, %361 : vector<8x256xf32>
    %cst_118 = arith.constant 0.000000e+00 : f32
    %cst_119 = arith.constant 6.000000e+00 : f32
    %363 = vector.broadcast %cst_118 : f32 to vector<8x256xf32>
    %364 = arith.maximumf %363, %362 : vector<8x256xf32>
    %365 = vector.broadcast %cst_119 : f32 to vector<8x256xf32>
    %366 = arith.minimumf %365, %364 : vector<8x256xf32>
    %cst_120 = arith.constant 0.166666672 : f32
    %367 = vector.broadcast %cst_120 : f32 to vector<8x256xf32>
    %368 = arith.mulf %366, %367 : vector<8x256xf32>
    %369 = vector.extract_strided_slice %357 {offsets = [8, 0], sizes = [8, 1], strides = [1, 1]} : vector<16x1xf32> to vector<8x1xf32>
    %370 = vector.broadcast %369 : vector<8x1xf32> to vector<8x256xf32>
    %371 = arith.mulf %326, %370 : vector<8x256xf32>
    %cst_121 = arith.constant 3.000000e+00 : f32
    %372 = vector.broadcast %cst_121 : f32 to vector<8x256xf32>
    %373 = arith.addf %371, %372 : vector<8x256xf32>
    %cst_122 = arith.constant 0.000000e+00 : f32
    %cst_123 = arith.constant 6.000000e+00 : f32
    %374 = vector.broadcast %cst_122 : f32 to vector<8x256xf32>
    %375 = arith.maximumf %374, %373 : vector<8x256xf32>
    %376 = vector.broadcast %cst_123 : f32 to vector<8x256xf32>
    %377 = arith.minimumf %376, %375 : vector<8x256xf32>
    %cst_124 = arith.constant 0.166666672 : f32
    %378 = vector.broadcast %cst_124 : f32 to vector<8x256xf32>
    %379 = arith.mulf %377, %378 : vector<8x256xf32>
    %cst_125 = arith.constant dense<0.000000e+00> : vector<8x256xf32>
    %380 = tpu.matmul %3, %368, %cst_125 {dimension_numbers = #tpu.dot_dimension_numbers<[1], [0], [0], [1], [0, 0, 1, 1], [], []>} : vector<8x8xf32>, vector<8x256xf32>, vector<8x256xf32> -> vector<8x256xf32>
    %cst_126 = arith.constant dense<0.000000e+00> : vector<8x256xf32>
    %381 = tpu.matmul %4, %379, %cst_126 {dimension_numbers = #tpu.dot_dimension_numbers<[1], [0], [0], [1], [0, 0, 1, 1], [], []>} : vector<8x8xf32>, vector<8x256xf32>, vector<8x256xf32> -> vector<8x256xf32>
    %382 = arith.addf %380, %381 : vector<8x256xf32>
    %cst_127 = arith.constant dense<0.000000e+00> : vector<8x1xf32>
    %383 = tpu.matmul %382, %7, %cst_127 {dimension_numbers = #tpu.dot_dimension_numbers<[1], [0], [0], [1], [0, 0, 1, 1], [], []>} : vector<8x256xf32>, vector<256x1xf32>, vector<8x1xf32> -> vector<8x1xf32>
    %384 = arith.addf %314, %383 : vector<8x1xf32>
    %385 = arith.mulf %382, %382 : vector<8x256xf32>
    %cst_128 = arith.constant dense<0.000000e+00> : vector<8x1xf32>
    %386 = tpu.matmul %385, %7, %cst_128 {dimension_numbers = #tpu.dot_dimension_numbers<[1], [0], [0], [1], [0, 0, 1, 1], [], []>} : vector<8x256xf32>, vector<256x1xf32>, vector<8x1xf32> -> vector<8x1xf32>
    %387 = arith.addf %318, %386 : vector<8x1xf32>
    %cst_129 = arith.constant 0.001953125 : f32
    %388 = vector.broadcast %cst_129 : f32 to vector<8x1xf32>
    %389 = arith.mulf %384, %388 : vector<8x1xf32>
    %cst_130 = arith.constant 0.001953125 : f32
    %390 = vector.broadcast %cst_130 : f32 to vector<8x1xf32>
    %391 = arith.mulf %387, %390 : vector<8x1xf32>
    %392 = arith.mulf %389, %389 : vector<8x1xf32>
    %393 = arith.subf %391, %392 : vector<8x1xf32>
    %cst_131 = arith.constant 0.000000e+00 : f32
    %394 = vector.broadcast %cst_131 : f32 to vector<8x1xf32>
    %395 = arith.maximumf %393, %394 : vector<8x1xf32>
    %c0_132 = arith.constant 0 : index
    %c0_133 = arith.constant 0 : index
    %396 = vector.load %arg15[%c0_132, %c0_133] : memref<8x1xf32, #tpu.memory_space<vmem>>, vector<8x1xf32>
    %cst_134 = arith.constant 9.99999974E-6 : f32
    %397 = vector.broadcast %cst_134 : f32 to vector<8x1xf32>
    %398 = arith.addf %395, %397 : vector<8x1xf32>
    %399 = math.rsqrt %398 : vector<8x1xf32>
    %400 = arith.mulf %396, %399 : vector<8x1xf32>
    %c0_135 = arith.constant 0 : index
    %c0_136 = arith.constant 0 : index
    %401 = vector.load %arg16[%c0_135, %c0_136] : memref<8x1xf32, #tpu.memory_space<vmem>>, vector<8x1xf32>
    %402 = arith.mulf %389, %400 : vector<8x1xf32>
    %403 = arith.subf %401, %402 : vector<8x1xf32>
    %404 = vector.broadcast %400 : vector<8x1xf32> to vector<8x256xf32>
    %405 = arith.mulf %311, %404 : vector<8x256xf32>
    %406 = vector.broadcast %403 : vector<8x1xf32> to vector<8x256xf32>
    %407 = arith.addf %405, %406 : vector<8x256xf32>
    %c0_137 = arith.constant 0 : index
    %c0_138 = arith.constant 0 : index
    %c0_139 = arith.constant 0 : index
    %408 = vector.load %arg17[%c0_137, %c0_138, %c0_139] : memref<2x8x256xf32, #tpu.memory_space<vmem>>, vector<1x8x256xf32>
    %409 = vector.shape_cast %408 : vector<1x8x256xf32> to vector<8x256xf32>
    %410 = vector.shape_cast %407 : vector<8x256xf32> to vector<1x8x256xf32>
    tpu.vector_store %arg17[%c0_137, %c0_138, %c0_139], %410 {strides = array<i32>} : memref<2x8x256xf32, #tpu.memory_space<vmem>>, vector<1x8x256xf32>,
    %411 = vector.broadcast %400 : vector<8x1xf32> to vector<8x256xf32>
    %412 = arith.mulf %382, %411 : vector<8x256xf32>
    %413 = vector.broadcast %403 : vector<8x1xf32> to vector<8x256xf32>
    %414 = arith.addf %412, %413 : vector<8x256xf32>
    %c1_140 = arith.constant 1 : index
    %c0_141 = arith.constant 0 : index
    %c0_142 = arith.constant 0 : index
    %415 = vector.load %arg17[%c1_140, %c0_141, %c0_142] : memref<2x8x256xf32, #tpu.memory_space<vmem>>, vector<1x8x256xf32>
    %416 = vector.shape_cast %415 : vector<1x8x256xf32> to vector<8x256xf32>
    %417 = vector.shape_cast %414 : vector<8x256xf32> to vector<1x8x256xf32>
    tpu.vector_store %arg17[%c1_140, %c0_141, %c0_142], %417 {strides = array<i32>} : memref<2x8x256xf32, #tpu.memory_space<vmem>>, vector<1x8x256xf32>,
    return
  }
}

</mosaic_0001>

<bundles_post_ra>
// kernel: tpu_custom_call.1
= control target key start
LH: loop header
LB: loop body
LE: loop exit
PB: predicated region body
PF: predicated region fallthrough
CT: control target
= control target key end

     0   :  { %s4328_s0 = inlined_call_operand.vmem [shape: f32[2,4,256], index: 0, kind: input, shape index: {}]   ;;  %s4329_s1 = inlined_call_operand.vmem [shape: f32[8,4], index: 1, kind: input, shape index: {}]   ;;  %s4330_s2 = inlined_call_operand.vmem [shape: f32[8,3], index: 2, kind: input, shape index: {}]   ;;  %s4331_s3 = inlined_call_operand.vmem [shape: f32[8,3], index: 3, kind: input, shape index: {}]   ;;  %s4332_s4 = inlined_call_operand.vmem [shape: f32[8,8], index: 4, kind: input, shape index: {}]   ;;  %s4333_s5 = inlined_call_operand.vmem [shape: f32[8,8], index: 5, kind: input, shape index: {}]   ;;  %s4334_s6 = inlined_call_operand.vmem [shape: f32[16,4], index: 6, kind: input, shape index: {}]   ;;  %s4335_s7 = inlined_call_operand.vmem [shape: f32[16,4], index: 7, kind: input, shape index: {}]   ;;  %s4336_s8 = inlined_call_operand.vmem [shape: s32[1,256], index: 8, kind: input, shape index: {}]   ;;  %s4337_s9 = inlined_call_operand.vmem [shape: f32[8,1], index: 9, kind: input, shape index: {}]   ;;  %s4338_s10 = inlined_call_operand.vmem [shape: f32[8,1], index: 10, kind: input, shape index: {}]   ;;  %s4339_s11 = inlined_call_operand.vmem [shape: f32[8,1], index: 11, kind: input, shape index: {}]   ;;  %s4340_s12 = inlined_call_operand.vmem [shape: f32[8,1], index: 12, kind: input, shape index: {}]   ;;  %s4341_s13 = inlined_call_operand.vmem [shape: f32[8,1], index: 13, kind: input, shape index: {}]   ;;  %s4342_s14 = inlined_call_operand.vmem [shape: f32[8,1], index: 14, kind: input, shape index: {}]   ;;  %s4343_s15 = inlined_call_operand.vmem [shape: f32[8,1], index: 15, kind: input, shape index: {}]   ;;  %s4344_s16 = inlined_call_operand.vmem [shape: f32[8,1], index: 16, kind: input, shape index: {}]   ;;  %s4345_s17 = inlined_call_operand.hbm [shape: f32[2,8,256], index: 17, kind: output, shape index: {}]  }
   0x1   :  { %4347 = sst [smem:[#allocation5_spill]] %s4328_s0 }
   0x2   :  { %4348 = sst [smem:[#allocation6_spill]] %s4329_s1 }
   0x3   :  { %s4349_s26 = sld [smem:[#allocation6_spill]]  ;;  %v3505_v1 = vmov 0   ;;  %v3506_v2 = vmov 2  }
   0x4   :  { %3460 = vset.pattern.permute.xlu0 %v3505_v1  ;;  %3462 = vset.pattern.permute.xlu1 %v3506_v2 }
   0x9   :  { %v57_v0 = vld [vmem:[%s4349_s26] sm:$0xff] }
   0xa   :  { %22 = vsyncpa [#allocation3], 0  ;;  %75 = vperm.xlu0 %3460, %v57_v0   ;;  %126 = vperm.xlu1 %3462, %v57_v0   ;;  %v3507_v3 = vmov 1.0|1.0   ;;  %v3508_v4 = vmov 1   ;;  %v3509_v5 = vmov 3   ;;  %v63_v6 = vlaneseq }
   0xb   :  { %3124 = vmatprep.subr.bf16.mxu0 %v3507_v3  ;;  %3140 = vmatprep.subr.bf16.mxu1 %v3507_v3  ;;  %s4350_s29 = sld [smem:[#allocation5_spill]]  ;;  %s3512_s24 = smov 16   ;;  %vm1520_vm12 = vcmask 31744   ;;  %vm1579_vm13 = vcmask 64512  }
   0xc   :  { %3125 = vmatpush3.bf16.msra.mxu0 %v3507_v3  ;;  %3141 = vmatpush3.bf16.msra.mxu1 %v3507_v3  ;;  %v80_v7 = vshrl.u32 %v63_v6, 7  ;;  %s3513_s25 = smov 112  }
   0xd   :  { %3126 = vmatprep.subr.bf16.mxu0 %v3507_v3  ;;  %3142 = vmatprep.subr.bf16.mxu1 %v3507_v3 }
   0xe   :  { %3461 = vset.pattern.permute.xlu0 %v3508_v4  ;;  %3463 = vset.pattern.permute.xlu1 %v3509_v5  ;;  %v3650_v8 = vsub.s32 0, %v80_v7  ;;  %v85_v9 = vsub.s32 4, %v80_v7  ;;  %v131_v12 = vsub.s32 2, %v80_v7  ;;  %v135_v13 = vsub.s32 6, %v80_v7 }
   0xf   :  { %100 = vperm.xlu0 %3461, %v57_v0   ;;  %152 = vperm.xlu1 %3463, %v57_v0   ;;  %v3658_v14 = vsub.s32 1, %v80_v7  ;;  %v109_v15 = vsub.s32 5, %v80_v7  ;;  %v157_v16 = vsub.s32 3, %v80_v7  ;;  %v161_v17 = vsub.s32 7, %v80_v7 }
  0x10   :  { %3127 = vmatpush3.bf16.msra.mxu0 %v3507_v3  ;;  %3143 = vmatpush3.bf16.msra.mxu1 %v3507_v3 }
  0x11   :  { %3128 = vmatprep.subr.bf16.mxu0 %v3507_v3  ;;  %3144 = vmatprep.subr.bf16.mxu1 %v3507_v3  ;;  %v72_v10 = vld [vmem:[%s4350_s29] sm:$0xff]  ;;  %v2419_v11 = vld [vmem:[%s4350_s29 + $0x8] sm:$0xff] }
  0x12   :  { %v82_v18 = vrot.slane %v72_v10, %v3650_v8  ;;  %v86_v19 = vrot.slane %v72_v10, %v85_v9  ;;  %v187_v20 = vrot.slane %v2419_v11, %v3650_v8  ;;  %v191_v21 = vrot.slane %v2419_v11, %v85_v9 }
  0x13   :  { %3464 = vset.pattern.permute.xlu1 %v3505_v1  ;;  %3465 = vset.pattern.permute.xlu0 %v3505_v1  ;;  %v132_v22 = vrot.slane %v72_v10, %v131_v12  ;;  %v136_v23 = vrot.slane %v72_v10, %v135_v13  ;;  %v229_v24 = vrot.slane %v2419_v11, %v131_v12 }
  0x14   :  { %3129 = vmatpush3.bf16.msra.mxu0 %v3507_v3  ;;  %3145 = vmatpush3.bf16.msra.mxu1 %v3507_v3  ;;  %v233_v25 = vrot.slane %v2419_v11, %v135_v13  ;;  %v106_v26 = vrot.slane %v72_v10, %v3658_v14  ;;  %v110_v27 = vrot.slane %v72_v10, %v109_v15 }
  0x15   :  { %3130 = vmatprep.subr.bf16.mxu0 %v3507_v3  ;;  %3146 = vmatprep.subr.bf16.mxu1 %v3507_v3  ;;  %v207_v28 = vrot.slane %v2419_v11, %v3658_v14  ;;  %v211_v29 = vrot.slane %v2419_v11, %v109_v15  ;;  %v158_v30 = vrot.slane %v72_v10, %v157_v16 }
  0x16   :  { %v162_v31 = vrot.slane %v72_v10, %v161_v17  ;;  %v251_v32 = vrot.slane %v2419_v11, %v157_v16  ;;  %v255_v33 = vrot.slane %v2419_v11, %v161_v17  ;;  %v92_v34 = vrot.slane %v82_v18, %v3650_v8 }
  0x17   :  { %v96_v35 = vrot.slane %v86_v19, %v3650_v8  ;;  %v197_v36 = vrot.slane %v187_v20, %v3650_v8  ;;  %v201_v37 = vrot.slane %v191_v21, %v3650_v8  ;;  %v142_v40 = vrot.slane %v132_v22, %v131_v12 }
  0x18   :  { %3131 = vmatpush3.bf16.msra.mxu0 %v3507_v3  ;;  %3147 = vmatpush3.bf16.msra.mxu1 %v3507_v3  ;;  %v146_v41 = vrot.slane %v136_v23, %v131_v12  ;;  %v239_v42 = vrot.slane %v229_v24, %v131_v12  ;;  %v243_v43 = vrot.slane %v233_v25, %v131_v12 }
  0x19   :  { %3132 = vmatprep.subr.bf16.mxu0 %v3507_v3  ;;  %3148 = vmatprep.subr.bf16.mxu1 %v3507_v3  ;;  %v116_v44 = vrot.slane %v106_v26, %v3658_v14  ;;  %v120_v45 = vrot.slane %v110_v27, %v3658_v14  ;;  %v217_v46 = vrot.slane %v207_v28, %v3658_v14 }
  0x1a   :  { %v221_v47 = vrot.slane %v211_v29, %v3658_v14  ;;  %v168_v48 = vrot.slane %v158_v30, %v157_v16  ;;  %v172_v49 = vrot.slane %v162_v31, %v157_v16  ;;  %v261_v50 = vrot.slane %v251_v32, %v157_v16 }
  0x1b   :  { %v265_v51 = vrot.slane %v255_v33, %v157_v16 }
  0x1c   :  { %3133 = vmatpush3.bf16.msra.mxu0 %v3507_v3  ;;  %3149 = vmatpush3.bf16.msra.mxu1 %v3507_v3 }
  0x1d   :  { %3134 = vmatprep.subr.bf16.mxu0 %v3507_v3  ;;  %3150 = vmatprep.subr.bf16.mxu1 %v3507_v3 }
  0x20   :  { %3135 = vmatpush3.bf16.msra.mxu0 %v3507_v3  ;;  %3151 = vmatpush3.bf16.msra.mxu1 %v3507_v3 }
  0x21   :  { %3136 = vmatprep.subr.bf16.mxu0 %v3507_v3  ;;  %3152 = vmatprep.subr.bf16.mxu1 %v3507_v3 }
  0x24   :  { %3137 = vmatpush3.bf16.msra.mxu0 %v3507_v3  ;;  %3153 = vmatpush3.bf16.msra.mxu1 %v3507_v3 }
  0x25   :  { %3138 = vmatprep.subr.bf16.mxu0 %v3507_v3  ;;  %3154 = vmatprep.subr.bf16.mxu1 %v3507_v3 }
  0x28   :  { %3139 = vmatpush3.bf16.msra.mxu0 %v3507_v3  ;;  %3155 = vmatpush3.bf16.msra.mxu1 %v3507_v3 }
  0x29   :  { %3156 = vmatprep.subr.bf16.mxu0 %v3507_v3  ;;  %3172 = vmatprep.subr.bf16.mxu1 %v3507_v3 }
  0x89   :  { %v76_v38 = vpop.permute.xlu0 %75  ;;  %v127_v39 = vpop.permute.xlu1 %126 }
  0x8a   :  { %v97_v52 = vmul.f32 %v92_v34, %v76_v38  ;;  %v98_v53 = vmul.f32 %v96_v35, %v76_v38  ;;  %v202_v54 = vmul.f32 %v197_v36, %v76_v38  ;;  %v203_v55 = vmul.f32 %v201_v37, %v76_v38 }
  0x8b   :  { %v147_v56 = vmul.f32 %v142_v40, %v127_v39  ;;  %v148_v57 = vmul.f32 %v146_v41, %v127_v39  ;;  %v244_v58 = vmul.f32 %v239_v42, %v127_v39  ;;  %v245_v59 = vmul.f32 %v243_v43, %v127_v39 }
  0x8e   :  { %v101_v60 = vpop.permute.xlu0 %100  ;;  %v153_v61 = vpop.permute.xlu1 %152 }
  0x8f   :  { %v121_v62 = vmul.f32 %v116_v44, %v101_v60  ;;  %v122_v63 = vmul.f32 %v120_v45, %v101_v60  ;;  %v222_v0 = vmul.f32 %v217_v46, %v101_v60  ;;  %v223_v5 = vmul.f32 %v221_v47, %v101_v60 }
  0x90   :  { %v173_v7 = vmul.f32 %v168_v48, %v153_v61  ;;  %v174_v9 = vmul.f32 %v172_v49, %v153_v61  ;;  %v266_v10 = vmul.f32 %v261_v50, %v153_v61  ;;  %v267_v11 = vmul.f32 %v265_v51, %v153_v61 }
  0x91   :  { %v123_v12 = vadd.f32 %v121_v62, %v97_v52  ;;  %v124_v13 = vadd.f32 %v122_v63, %v98_v53  ;;  %v224_v15 = vadd.f32 %v222_v0, %v202_v54  ;;  %v225_v16 = vadd.f32 %v223_v5, %v203_v55  ;;  %v559_v53 = vld [vmem:[%s4337_s9] sm:$0xff]  ;;  %s3511_s9 = smov 127  }
  0x93   :  { %v247_v17 = vadd.f32 %v245_v59, %v225_v16  ;;  %v150_v18 = vadd.f32 %v148_v57, %v124_v13  ;;  %v246_v19 = vadd.f32 %v244_v58, %v224_v15  ;;  %v149_v20 = vadd.f32 %v147_v56, %v123_v12  ;;  %v563_v56 = vld [vmem:[%s4338_s10] sm:$0xff] }
  0x94   :  { %v58_v59 = vld [vmem:[%s4330_s2] sm:$0xff]  ;;  %s3510_s2 = smov 1  }
  0x95   :  { %v269_v21 = vadd.f32 %v267_v11, %v247_v17  ;;  %v176_v22 = vadd.f32 %v174_v9, %v150_v18  ;;  %v268_v23 = vadd.f32 %v266_v10, %v246_v19  ;;  %v175_v24 = vadd.f32 %v173_v7, %v149_v20  ;;  %v59_v11 = vld [vmem:[%s4331_s3] sm:$0xff] }
  0x96   :  { %v3812_v17 = vand.u32 127, %v63_v6 }
  0x97   :  { %v3672_v25 = vmax.f32 %v269_v21, 0.0  ;;  %v3674_v26 = vmax.f32 %v176_v22, 0.0  ;;  %v3676_v27 = vmax.f32 %v268_v23, 0.0  ;;  %v3678_v28 = vmax.f32 %v175_v24, 0.0 }
  0x98   :  { %vm591_vm2 = vcmp.lt.s32.totalorder %v3812_v17, 1  ;;  %vm619_vm5 = vcmp.lt.s32.totalorder %v3812_v17, 127  ;;  %vm654_vm8 = vcmp.lt.s32.totalorder %v3812_v17, 16  ;;  %vm675_vm9 = vcmp.lt.s32.totalorder %v3812_v17, 112 }
  0x99   :  { %336 = vmatprep.mubr.f32.mxu0 %v3672_v25  ;;  %406 = vmatprep.mubr.f32.mxu1 %v3674_v26  ;;  %v413_v29 = vmul.f32 %v3672_v25, %v3672_v25  ;;  %v180_v30 = vmul.f32 %v3674_v26, %v3674_v26  ;;  %v412_v31 = vmul.f32 %v3676_v27, %v3676_v27  ;;  %vm68_vm11 = vcmp.ge.s32.totalorder %v3812_v17, 16 }
  0x9a   :  { %337 = vmatmul.mubr.f32.vlgmr.msra.gmra.mrb[0].mxu0 %v3676_v27  ;;  %407 = vmatmul.mubr.f32.vlgmr.msra.gmra.mrb[0].mxu1 %v3678_v28  ;;  %v179_v32 = vmul.f32 %v3678_v28, %v3678_v28 }
  0x9b   :  { %3157 = vmatpush3.bf16.msra.mxu0 %v3507_v3  ;;  %3173 = vmatpush3.bf16.msra.mxu1 %v3507_v3 }
  0x9c   :  { %478 = vmatprep.mubr.f32.mxu0 %v413_v29  ;;  %548 = vmatprep.mubr.f32.mxu1 %v180_v30 }
  0x9d   :  { %3158 = vmatprep.subr.bf16.mxu0 %v3507_v3  ;;  %3174 = vmatprep.subr.bf16.mxu1 %v3507_v3 }
  0x9f   :  { %3159 = vmatpush3.bf16.msra.mxu0 %v3507_v3  ;;  %3175 = vmatpush3.bf16.msra.mxu1 %v3507_v3 }
  0xa0   :  { %3160 = vmatprep.subr.bf16.mxu0 %v3507_v3  ;;  %3176 = vmatprep.subr.bf16.mxu1 %v3507_v3 }
  0xa3   :  { %3161 = vmatpush3.bf16.msra.mxu0 %v3507_v3  ;;  %3177 = vmatpush3.bf16.msra.mxu1 %v3507_v3 }
  0xa4   :  { %3162 = vmatprep.subr.bf16.mxu0 %v3507_v3  ;;  %3178 = vmatprep.subr.bf16.mxu1 %v3507_v3 }
  0xa7   :  { %3163 = vmatpush3.bf16.msra.mxu0 %v3507_v3  ;;  %3179 = vmatpush3.bf16.msra.mxu1 %v3507_v3 }
  0xa8   :  { %3164 = vmatprep.subr.bf16.mxu0 %v3507_v3  ;;  %3180 = vmatprep.subr.bf16.mxu1 %v3507_v3 }
  0xab   :  { %3165 = vmatpush3.bf16.msra.mxu0 %v3507_v3  ;;  %3181 = vmatpush3.bf16.msra.mxu1 %v3507_v3 }
  0xac   :  { %3166 = vmatprep.subr.bf16.mxu0 %v3507_v3  ;;  %3182 = vmatprep.subr.bf16.mxu1 %v3507_v3 }
  0xaf   :  { %3167 = vmatpush3.bf16.msra.mxu0 %v3507_v3  ;;  %3183 = vmatpush3.bf16.msra.mxu1 %v3507_v3 }
  0xb0   :  { %3168 = vmatprep.subr.bf16.mxu0 %v3507_v3  ;;  %3184 = vmatprep.subr.bf16.mxu1 %v3507_v3 }
  0xb3   :  { %3169 = vmatpush3.bf16.msra.mxu0 %v3507_v3  ;;  %3185 = vmatpush3.bf16.msra.mxu1 %v3507_v3 }
  0xb4   :  { %3170 = vmatprep.subr.bf16.mxu0 %v3507_v3  ;;  %3186 = vmatprep.subr.bf16.mxu1 %v3507_v3 }
  0xb7   :  { %3171 = vmatpush3.bf16.msra.mxu0 %v3507_v3  ;;  %3187 = vmatpush3.bf16.msra.mxu1 %v3507_v3 }
  0xb8   :  { %3204 = vmatprep.subr.bf16.mxu1 %v3507_v3  ;;  %3188 = vmatprep.subr.bf16.mxu0 %v3507_v3 }
  0xba   :  { %479 = vmatmul.mubr.f32.vlgmr.msra.gmra.mrb[2].mxu0 %v412_v31  ;;  %549 = vmatmul.mubr.f32.vlgmr.msra.gmra.mrb[2].mxu1 %v179_v32 }
  0xbb   :  { %3205 = vmatpush3.bf16.msra.mxu1 %v3507_v3  ;;  %3189 = vmatpush3.bf16.msra.mxu0 %v3507_v3 }
  0xbc   :  { %3206 = vmatprep.subr.bf16.mxu1 %v3507_v3  ;;  %3190 = vmatprep.subr.bf16.mxu0 %v3507_v3 }
  0xbf   :  { %3207 = vmatpush3.bf16.msra.mxu1 %v3507_v3  ;;  %3191 = vmatpush3.bf16.msra.mxu0 %v3507_v3 }
  0xc0   :  { %3208 = vmatprep.subr.bf16.mxu1 %v3507_v3  ;;  %3192 = vmatprep.subr.bf16.mxu0 %v3507_v3 }
  0xc3   :  { %3209 = vmatpush3.bf16.msra.mxu1 %v3507_v3  ;;  %3193 = vmatpush3.bf16.msra.mxu0 %v3507_v3 }
  0xc4   :  { %3210 = vmatprep.subr.bf16.mxu1 %v3507_v3  ;;  %3194 = vmatprep.subr.bf16.mxu0 %v3507_v3 }
  0xc7   :  { %3211 = vmatpush3.bf16.msra.mxu1 %v3507_v3  ;;  %3195 = vmatpush3.bf16.msra.mxu0 %v3507_v3 }
  0xc8   :  { %3212 = vmatprep.subr.bf16.mxu1 %v3507_v3  ;;  %3196 = vmatprep.subr.bf16.mxu0 %v3507_v3 }
  0xcb   :  { %3213 = vmatpush3.bf16.msra.mxu1 %v3507_v3  ;;  %3197 = vmatpush3.bf16.msra.mxu0 %v3507_v3 }
  0xcc   :  { %3214 = vmatprep.subr.bf16.mxu1 %v3507_v3  ;;  %3198 = vmatprep.subr.bf16.mxu0 %v3507_v3 }
  0xcf   :  { %3215 = vmatpush3.bf16.msra.mxu1 %v3507_v3  ;;  %3199 = vmatpush3.bf16.msra.mxu0 %v3507_v3 }
  0xd0   :  { %3216 = vmatprep.subr.bf16.mxu1 %v3507_v3  ;;  %3200 = vmatprep.subr.bf16.mxu0 %v3507_v3 }
  0xd3   :  { %3217 = vmatpush3.bf16.msra.mxu1 %v3507_v3  ;;  %3201 = vmatpush3.bf16.msra.mxu0 %v3507_v3 }
  0xd4   :  { %3218 = vmatprep.subr.bf16.mxu1 %v3507_v3  ;;  %3202 = vmatprep.subr.bf16.mxu0 %v3507_v3 }
  0xd7   :  { %3219 = vmatpush3.bf16.msra.mxu1 %v3507_v3  ;;  %3203 = vmatpush3.bf16.msra.mxu0 %v3507_v3 }
  0xd8   :  { %3236 = vmatprep.subr.bf16.mxu1 %v3507_v3  ;;  %3220 = vmatprep.subr.bf16.mxu0 %v3507_v3 }
 0x16d   :  { %v2456_v33 = vpop.f32.mrb[0].mxu0  ;;  %v2491_v34 = vpop.f32.mrb[0].mxu1 }
 0x16e   :  { %v2457_v35 = vpop.f32.mrb[1].mxu0  ;;  %v2492_v36 = vpop.f32.mrb[1].mxu1 }
 0x16f   :  { %v2458_v37 = vadd.f32 %v2457_v35, %v2456_v33  ;;  %v2493_v38 = vadd.f32 %v2492_v36, %v2491_v34 }
 0x171   :  { %v409_v39 = vadd.f32 %v2493_v38, %v2458_v37 }
 0x173   :  { %v554_v44 = vmul.f32 0.001953125, %v409_v39 }
 0x175   :  { %v556_v48 = vmul.f32 %v554_v44, %v554_v44 }
 0x18d   :  { %v2526_v40 = vpop.f32.mrb[2].mxu0  ;;  %v2561_v41 = vpop.f32.mrb[2].mxu1 }
 0x18e   :  { %v2527_v42 = vpop.f32.mrb[3].mxu0  ;;  %v2562_v43 = vpop.f32.mrb[3].mxu1 }
 0x18f   :  { %v2528_v45 = vadd.f32 %v2527_v42, %v2526_v40  ;;  %v2563_v46 = vadd.f32 %v2562_v43, %v2561_v41 }
 0x191   :  { %v551_v47 = vadd.f32 %v2563_v46, %v2528_v45 }
 0x193   :  { %v555_v49 = vmul.f32 0.001953125, %v551_v47 }
 0x195   :  { %v557_v50 = vsub.f32 %v555_v49, %v556_v48 }
 0x197   :  { %v558_v51 = vmax.f32 %v557_v50, 0.0 }
 0x199   :  { %v560_v52 = vadd.f32 1e-05, %v558_v51 }
 0x19b   :  { %3473 = vrsqrt.f32 %v560_v52 }
 0x1a5   :  { %v3474_v54 = vpop.eup %3473 }
 0x1a6   :  { %v562_v55 = vmul.f32 %v3474_v54, %v559_v53 }
 0x1a8   :  { %568 = vperm.xlu1 %3464, %v562_v55   ;;  %v564_v57 = vmul.f32 %v562_v55, %v554_v44 }
 0x1aa   :  { %v565_v58 = vsub.f32 %v563_v56, %v564_v57 }
 0x1ac   :  { %575 = vperm.xlu0 %3465, %v565_v58   ;;  %3466 = vset.pattern.permute.xlu1 %v3508_v4 }
 0x1ad   :  { %582 = vperm.xlu1 %3466, %v58_v59  }
 0x1b0   :  { %3468 = vset.pattern.permute.xlu0 %v3506_v2 }
 0x1b1   :  { %3467 = vset.pattern.permute.xlu1 %v3505_v1  ;;  %636 = vperm.xlu0 %3468, %v58_v59  }
 0x1b2   :  { %608 = vperm.xlu1 %3467, %v58_v59  }
 0x1b5   :  { %3469 = vset.pattern.permute.xlu0 %v3508_v4 }
 0x227   :  { %v569_v60 = vpop.permute.xlu1 %568 }
 0x228   :  { %v571_v61 = vmul.f32 %v569_v60, %v3678_v28  ;;  %v696_v62 = vmul.f32 %v569_v60, %v3676_v27  ;;  %v572_v7 = vmul.f32 %v569_v60, %v3674_v26  ;;  %v697_v4 = vmul.f32 %v569_v60, %v3672_v25 }
 0x22b   :  { %v576_v63 = vpop.permute.xlu0 %575 }
 0x22c   :  { %v3771_v0 = vadd.f32 %v576_v63, %v571_v61  ;;  %v3773_v5 = vadd.f32 %v696_v62, %v576_v63  ;;  %v3778_v9 = vadd.f32 %v576_v63, %v572_v7  ;;  %v3783_v10 = vadd.f32 %v697_v4, %v576_v63  ;;  %v583_v12 = vpop.permute.xlu1 %582 }
 0x22e   :  { %587 = vrot.lane.b32.xlu1 %v3771_v0, %s3510_s2  ;;  %702 = vrot.lane.b32.xlu0 %v3773_v5, %s3510_s2  ;;  %v586_v40 = vmul.f32 %v583_v12, %v3778_v9  ;;  %v700_v51 = vmul.f32 %v3773_v5, %v583_v12  ;;  %v701_v52 = vmul.f32 %v3783_v10, %v583_v12 }
 0x230   :  { %v637_v16 = vpop.permute.xlu0 %636 }
 0x231   :  { %v609_v13 = vpop.permute.xlu1 %608 }
 0x232   :  { %589 = vrot.lane.b32.xlu1 %v3778_v9, %s3510_s2  ;;  %615 = vrot.lane.b32.xlu0 %v3771_v0, %s3511_s9 }
 0x236   :  { %704 = vrot.lane.b32.xlu1 %v3783_v10, %s3510_s2  ;;  %714 = vrot.lane.b32.xlu0 %v3773_v5, %s3511_s9 }
 0x23a   :  { %617 = vrot.lane.b32.xlu1 %v3778_v9, %s3511_s9  ;;  %645 = vperm.xlu0 %3469, %v59_v11  }
 0x23e   :  { %716 = vrot.lane.b32.xlu1 %v3783_v10, %s3511_s9  ;;  %650 = vrot.lane.b32.xlu0 %v3771_v0, %s3512_s24 }
 0x23f   :  { %3471 = vset.pattern.permute.xlu0 %v3505_v1 }
 0x242   :  { %664 = vperm.xlu1 %3467, %v59_v11   ;;  %728 = vrot.lane.b32.xlu0 %v3773_v5, %s3512_s24 }
 0x246   :  { %3470 = vset.pattern.permute.xlu1 %v3506_v2  ;;  %671 = vrot.lane.b32.xlu0 %v3771_v0, %s3513_s25  ;;  %v62_v2 = vld [vmem:[%s4336_s8] sm:$0x3] }
 0x247   :  { %685 = vperm.xlu1 %3470, %v59_v11   ;;  %vm66_vm0 = vcmp.ge.s32.totalorder %v62_v2, 1  ;;  %vm67_vm1 = vcmp.lt.s32.totalorder %v62_v2, 15 }
 0x248   :  { %v594_v15 = vsel %vm66_vm0, 1, %v3505_v1  ;;  %v622_v24 = vsel %vm67_vm1, 1, %v3505_v1 }
 0x249   :  { %v598_v19 = vrot.slane %v594_v15, %v3650_v8  ;;  %v602_v20 = vrot.slane %v594_v15, %v3658_v14  ;;  %v626_v28 = vrot.slane %v622_v24, %v3650_v8  ;;  %v630_v29 = vrot.slane %v622_v24, %v3658_v14 }
 0x24a   :  { %740 = vrot.lane.b32.xlu0 %v3773_v5, %s3513_s25  ;;  %v585_v14 = vmul.f32 %v583_v12, %v3771_v0 }
 0x24b   :  { %652 = vrot.lane.b32.xlu1 %v3778_v9, %s3512_s24  ;;  %vm3817_vm3 = vcmp.eq.s32.totalorder %v598_v19, 1  ;;  %vm3822_vm4 = vcmp.eq.s32.totalorder %v602_v20, 1  ;;  %vm3835_vm6 = vcmp.eq.s32.totalorder %v626_v28, 1  ;;  %vm3839_vm7 = vcmp.eq.s32.totalorder %v630_v29, 1 }
 0x24c   :  { %3472 = vset.pattern.permute.xlu1 %v3505_v1 }
 0x24f   :  { %730 = vrot.lane.b32.xlu1 %v3783_v10, %s3512_s24 }
 0x253   :  { %673 = vrot.lane.b32.xlu1 %v3778_v9, %s3513_s25 }
 0x257   :  { %742 = vrot.lane.b32.xlu1 %v3783_v10, %s3513_s25  ;;  %s3515_s25 = smov [#allocation2]  }
 0x258   :  { %s2408_s3 = sshll.u32 %s3515_s25, 4  ;;  %s2409_s3 = int_to_ptr.vmem [resolvable:$true] %s2408_s3 }
 0x259   :  { %p3486_p1 = scmp.lt.s32.totalorder %s2409_s3, %s2409_s3 }
 0x2a0   :  { %v588_v18 = vpop.permute.xlu1 %587  ;;  %v703_v21 = vpop.permute.xlu0 %702 }
 0x2a4   :  { %v590_v23 = vpop.permute.xlu1 %589  ;;  %v616_v34 = vpop.permute.xlu0 %615 }
 0x2a5   :  { %v592_v6 = vsel %vm591_vm2, %v588_v18, %v590_v23  ;;  %v593_v26 = vsel %vm591_vm2, %v590_v23, %v588_v18 }
 0x2a6   :  { %v605_v27 = vsel %vm3817_vm3, %v593_v26, 0.0  ;;  %v606_v30 = vsel %vm3822_vm4, %v592_v6, 0.0 }
 0x2a7   :  { %v611_v1 = vmul.f32 %v609_v13, %v605_v27  ;;  %v612_v35 = vmul.f32 %v609_v13, %v606_v30 }
 0x2a8   :  { %v705_v31 = vpop.permute.xlu1 %704  ;;  %v715_v53 = vpop.permute.xlu0 %714 }
 0x2a9   :  { %v706_v32 = vsel %vm591_vm2, %v703_v21, %v705_v31  ;;  %v707_v33 = vsel %vm591_vm2, %v705_v31, %v703_v21  ;;  %v613_v43 = vadd.f32 %v611_v1, %v585_v14  ;;  %v614_v47 = vadd.f32 %v612_v35, %v586_v40 }
 0x2aa   :  { %v708_v36 = vsel %vm3817_vm3, %v707_v33, 0.0  ;;  %v709_v38 = vsel %vm3822_vm4, %v706_v32, 0.0  ;;  %v65_v21 = vadd.s32 128, %v3812_v17 }
 0x2ab   :  { %v710_v44 = vmul.f32 %v708_v36, %v609_v13  ;;  %v711_v48 = vmul.f32 %v709_v38, %v609_v13 }
 0x2ac   :  { %v618_v39 = vpop.permute.xlu1 %617  ;;  %vm71_vm10 = vcmp.lt.s32.totalorder %v65_v21, 240 }
 0x2ad   :  { %v620_v41 = vsel %vm619_vm5, %v616_v34, %v618_v39  ;;  %v621_v42 = vsel %vm619_vm5, %v618_v39, %v616_v34  ;;  %v712_v59 = vadd.f32 %v710_v44, %v700_v51  ;;  %v713_v62 = vadd.f32 %v711_v48, %v701_v52 }
 0x2ae   :  { %v633_v45 = vsel %vm3835_vm6, %v620_v41, 0.0  ;;  %v634_v46 = vsel %vm3839_vm7, %v621_v42, 0.0 }
 0x2af   :  { %v639_v49 = vmul.f32 %v637_v16, %v633_v45  ;;  %v640_v50 = vmul.f32 %v637_v16, %v634_v46 }
 0x2b0   :  { %v717_v54 = vpop.permute.xlu1 %716 }
 0x2b1   :  { %v3857_v55 = vadd.f32 %v639_v49, %v613_v43  ;;  %v718_v56 = vsel %vm619_vm5, %v715_v53, %v717_v54  ;;  %v719_v57 = vsel %vm619_vm5, %v717_v54, %v715_v53  ;;  %v3863_v58 = vadd.f32 %v640_v50, %v614_v47 }
 0x2b2   :  { %v720_v60 = vsel %vm3835_vm6, %v718_v56, 0.0  ;;  %v721_v61 = vsel %vm3839_vm7, %v719_v57, 0.0 }
 0x2b3   :  { %v722_v63 = vmul.f32 %v720_v60, %v637_v16  ;;  %v723_v7 = vmul.f32 %v721_v61, %v637_v16  ;;  %886 = vmatprep.mubr.f32.mxu1 %v3863_v58  ;;  %v693_v4 = vmul.f32 %v3863_v58, %v3863_v58  ;;  %v692_v27 = vmul.f32 %v3857_v55, %v3857_v55 }
 0x2b4   :  { %887 = vmatmul.mubr.f32.vlgmr.msra.gmra.mrb[4].mxu1 %v3857_v55 }
 0x2b5   :  { %v3873_v11 = vadd.f32 %v722_v63, %v712_v59  ;;  %3237 = vmatpush3.bf16.msra.mxu1 %v3507_v3  ;;  %1028 = vmatprep.mubr.f32.mxu1 %v693_v4  ;;  %v3876_v12 = vadd.f32 %v723_v7, %v713_v62 }
 0x2b6   :  { %3238 = vmatprep.subr.bf16.mxu1 %v3507_v3 }
 0x2b7   :  { %816 = vmatprep.mubr.f32.mxu0 %v3876_v12  ;;  %v893_v2 = vmul.f32 %v3876_v12, %v3876_v12 }
 0x2b8   :  { %817 = vmatmul.mubr.f32.vlgmr.msra.gmra.mrb[4].mxu0 %v3873_v11 }
 0x2b9   :  { %3221 = vmatpush3.bf16.msra.mxu0 %v3507_v3  ;;  %3239 = vmatpush3.bf16.msra.mxu1 %v3507_v3  ;;  %v3889_v13 = vpop.permute.xlu0 %645 }
 0x2ba   :  { %958 = vmatprep.mubr.f32.mxu0 %v893_v2  ;;  %3222 = vmatprep.subr.bf16.mxu0 %v3507_v3  ;;  %v649_v28 = vmul.f32 %v3889_v13, %v3778_v9  ;;  %v892_v9 = vmul.f32 %v3873_v11, %v3873_v11  ;;  %v727_v35 = vmul.f32 %v3783_v10, %v3889_v13 }
 0x2bb   :  { %3240 = vmatprep.subr.bf16.mxu1 %v3507_v3  ;;  %v648_v45 = vmul.f32 %v3889_v13, %v3771_v0  ;;  %v726_v50 = vmul.f32 %v3773_v5, %v3889_v13 }
 0x2bd   :  { %3223 = vmatpush3.bf16.msra.mxu0 %v3507_v3  ;;  %3241 = vmatpush3.bf16.msra.mxu1 %v3507_v3  ;;  %v3899_v16 = vpop.permute.xlu0 %650 }
 0x2be   :  { %3224 = vmatprep.subr.bf16.mxu0 %v3507_v3  ;;  %3242 = vmatprep.subr.bf16.mxu1 %v3507_v3 }
 0x2c1   :  { %3225 = vmatpush3.bf16.msra.mxu0 %v3507_v3  ;;  %3243 = vmatpush3.bf16.msra.mxu1 %v3507_v3  ;;  %v3895_v15 = vpop.permute.xlu1 %664  ;;  %v3909_v19 = vpop.permute.xlu0 %728 }
 0x2c2   :  { %3226 = vmatprep.subr.bf16.mxu0 %v3507_v3  ;;  %3244 = vmatprep.subr.bf16.mxu1 %v3507_v3 }
 0x2c5   :  { %3227 = vmatpush3.bf16.msra.mxu0 %v3507_v3  ;;  %3245 = vmatpush3.bf16.msra.mxu1 %v3507_v3  ;;  %v672_v24 = vpop.permute.xlu0 %671 }
 0x2c6   :  { %v3903_v18 = vpop.permute.xlu1 %685  ;;  %3228 = vmatprep.subr.bf16.mxu0 %v3507_v3  ;;  %3246 = vmatprep.subr.bf16.mxu1 %v3507_v3 }
 0x2c9   :  { %3229 = vmatpush3.bf16.msra.mxu0 %v3507_v3  ;;  %3247 = vmatpush3.bf16.msra.mxu1 %v3507_v3  ;;  %v741_v1 = vpop.permute.xlu0 %740 }
 0x2ca   :  { %v653_v20 = vpop.permute.xlu1 %652  ;;  %3230 = vmatprep.subr.bf16.mxu0 %v3507_v3  ;;  %3248 = vmatprep.subr.bf16.mxu1 %v3507_v3 }
 0x2cb   :  { %v655_v22 = vsel %vm654_vm8, %v3899_v16, %v653_v20  ;;  %v656_v39 = vsel %vm654_vm8, %v653_v20, %v3899_v16 }
 0x2cc   :  { %v668_v25 = vmul.f32 %v3895_v15, %v655_v22  ;;  %v661_v40 = vsel %vm68_vm11, %v656_v39, 0.0 }
 0x2cd   :  { %3231 = vmatpush3.bf16.msra.mxu0 %v3507_v3  ;;  %3249 = vmatpush3.bf16.msra.mxu1 %v3507_v3  ;;  %v667_v43 = vmul.f32 %v3895_v15, %v661_v40 }
 0x2ce   :  { %v731_v23 = vpop.permute.xlu1 %730  ;;  %3232 = vmatprep.subr.bf16.mxu0 %v3507_v3  ;;  %3250 = vmatprep.subr.bf16.mxu1 %v3507_v3  ;;  %v670_v31 = vadd.f32 %v668_v25, %v649_v28 }
 0x2cf   :  { %v732_v6 = vsel %vm654_vm8, %v3909_v19, %v731_v23  ;;  %v733_v41 = vsel %vm654_vm8, %v731_v23, %v3909_v19  ;;  %v669_v48 = vadd.f32 %v667_v43, %v648_v45 }
 0x2d0   :  { %v737_v32 = vmul.f32 %v732_v6, %v3895_v15  ;;  %v734_v44 = vsel %vm68_vm11, %v733_v41, 0.0  ;;  %v1321_v6 = vld [vmem:[%s4339_s11] sm:$0xff] }
 0x2d1   :  { %3233 = vmatpush3.bf16.msra.mxu0 %v3507_v3  ;;  %3251 = vmatpush3.bf16.msra.mxu1 %v3507_v3  ;;  %v736_v49 = vmul.f32 %v734_v44, %v3895_v15 }
 0x2d2   :  { %v674_v26 = vpop.permute.xlu1 %673  ;;  %3234 = vmatprep.subr.bf16.mxu0 %v3507_v3  ;;  %3268 = vmatprep.subr.bf16.mxu1 %v3507_v3  ;;  %v739_v14 = vadd.f32 %v737_v32, %v727_v35 }
 0x2d3   :  { %v677_v29 = vsel %vm675_vm9, %v674_v26, %v672_v24  ;;  %v676_v42 = vsel %vm675_vm9, %v672_v24, %v674_v26  ;;  %v738_v17 = vadd.f32 %v736_v49, %v726_v50  ;;  %v1325_v49 = vld [vmem:[%s4340_s12] sm:$0xff] }
 0x2d4   :  { %v683_v30 = vsel %vm71_vm10, %v677_v29, 0.0  ;;  %1029 = vmatmul.mubr.f32.vlgmr.msra.gmra.mrb[6].mxu1 %v692_v27  ;;  %v688_v46 = vmul.f32 %v3903_v18, %v676_v42  ;;  %v1337_v50 = vld [vmem:[%s4342_s14] sm:$0xff] }
 0x2d5   :  { %v689_v33 = vmul.f32 %v3903_v18, %v683_v30  ;;  %3235 = vmatpush3.bf16.msra.mxu0 %v3507_v3  ;;  %3269 = vmatpush3.bf16.msra.mxu1 %v3507_v3 }
 0x2d6   :  { %v743_v34 = vpop.permute.xlu1 %742  ;;  %3252 = vmatprep.subr.bf16.mxu0 %v3507_v3  ;;  %3270 = vmatprep.subr.bf16.mxu1 %v3507_v3  ;;  %v4002_v0 = vadd.f32 %v688_v46, %v669_v48  ;;  %v1333_v46 = vld [vmem:[%s4341_s13] sm:$0xff] }
 0x2d7   :  { %v745_v36 = vsel %vm675_vm9, %v743_v34, %v741_v1  ;;  %v3950_v37 = vadd.f32 %v689_v33, %v670_v31  ;;  %v744_v47 = vsel %vm675_vm9, %v741_v1, %v743_v34 }
 0x2d8   :  { %v747_v8 = vsel %vm71_vm10, %v745_v36, 0.0  ;;  %959 = vmatmul.mubr.f32.vlgmr.msra.gmra.mrb[6].mxu0 %v892_v9  ;;  %v748_v51 = vmul.f32 %v744_v47, %v3903_v18  ;;  %v694_v54 = vmul.f32 %v4002_v0, %v4002_v0 }
 0x2d9   :  { %v749_v38 = vmul.f32 %v747_v8, %v3903_v18  ;;  %3253 = vmatpush3.bf16.msra.mxu0 %v3507_v3  ;;  %3271 = vmatpush3.bf16.msra.mxu1 %v3507_v3  ;;  %v695_v52 = vmul.f32 %v3950_v37, %v3950_v37 }
 0x2da   :  { %1168 = vmatprep.mubr.f32.mxu1 %v3950_v37  ;;  %3254 = vmatprep.subr.bf16.mxu0 %v3507_v3  ;;  %v4012_v53 = vadd.f32 %v748_v51, %v738_v17 }
 0x2db   :  { %3272 = vmatprep.subr.bf16.mxu1 %v3507_v3  ;;  %v3959_v10 = vadd.f32 %v749_v38, %v739_v14 }
 0x2dc   :  { %v1174_v56 = vmul.f32 %v4012_v53, %v4012_v53 }
 0x2dd   :  { %3255 = vmatpush3.bf16.msra.mxu0 %v3507_v3  ;;  %3273 = vmatpush3.bf16.msra.mxu1 %v3507_v3  ;;  %v1175_v5 = vmul.f32 %v3959_v10, %v3959_v10 }
 0x2de   :  { %1098 = vmatprep.mubr.f32.mxu0 %v3959_v10  ;;  %3256 = vmatprep.subr.bf16.mxu0 %v3507_v3 }
 0x2df   :  { %3274 = vmatprep.subr.bf16.mxu1 %v3507_v3 }
 0x2e1   :  { %3257 = vmatpush3.bf16.msra.mxu0 %v3507_v3  ;;  %3275 = vmatpush3.bf16.msra.mxu1 %v3507_v3 }
 0x2e2   :  { %3258 = vmatprep.subr.bf16.mxu0 %v3507_v3  ;;  %3276 = vmatprep.subr.bf16.mxu1 %v3507_v3 }
 0x2e5   :  { %3259 = vmatpush3.bf16.msra.mxu0 %v3507_v3  ;;  %3277 = vmatpush3.bf16.msra.mxu1 %v3507_v3 }
 0x2e6   :  { %3260 = vmatprep.subr.bf16.mxu0 %v3507_v3  ;;  %3278 = vmatprep.subr.bf16.mxu1 %v3507_v3 }
 0x2e9   :  { %3261 = vmatpush3.bf16.msra.mxu0 %v3507_v3  ;;  %3279 = vmatpush3.bf16.msra.mxu1 %v3507_v3 }
 0x2ea   :  { %3262 = vmatprep.subr.bf16.mxu0 %v3507_v3  ;;  %3280 = vmatprep.subr.bf16.mxu1 %v3507_v3 }
 0x2ed   :  { %3263 = vmatpush3.bf16.msra.mxu0 %v3507_v3  ;;  %3281 = vmatpush3.bf16.msra.mxu1 %v3507_v3 }
 0x2ee   :  { %3264 = vmatprep.subr.bf16.mxu0 %v3507_v3  ;;  %3282 = vmatprep.subr.bf16.mxu1 %v3507_v3 }
 0x2f1   :  { %3265 = vmatpush3.bf16.msra.mxu0 %v3507_v3  ;;  %3283 = vmatpush3.bf16.msra.mxu1 %v3507_v3 }
 0x2f2   :  { %3266 = vmatprep.subr.bf16.mxu0 %v3507_v3  ;;  %3300 = vmatprep.subr.bf16.mxu1 %v3507_v3 }
 0x2f4   :  { %1169 = vmatmul.mubr.f32.vlgmr.msra.gmra.mrb[8].mxu1 %v4002_v0 }
 0x2f5   :  { %3267 = vmatpush3.bf16.msra.mxu0 %v3507_v3  ;;  %3301 = vmatpush3.bf16.msra.mxu1 %v3507_v3 }
 0x2f6   :  { %1310 = vmatprep.mubr.f32.mxu1 %v695_v52  ;;  %3284 = vmatprep.subr.bf16.mxu0 %v3507_v3 }
 0x2f7   :  { %3302 = vmatprep.subr.bf16.mxu1 %v3507_v3 }
 0x2f8   :  { %1099 = vmatmul.mubr.f32.vlgmr.msra.gmra.mrb[8].mxu0 %v4012_v53 }
 0x2f9   :  { %3285 = vmatpush3.bf16.msra.mxu0 %v3507_v3  ;;  %1240 = vmatprep.mubr.f32.mxu0 %v1175_v5 }
 0x2fa   :  { %3303 = vmatpush3.bf16.msra.mxu1 %v3507_v3  ;;  %3286 = vmatprep.subr.bf16.mxu0 %v3507_v3 }
 0x2fb   :  { %3304 = vmatprep.subr.bf16.mxu1 %v3507_v3 }
 0x2fd   :  { %3287 = vmatpush3.bf16.msra.mxu0 %v3507_v3 }
 0x2fe   :  { %3305 = vmatpush3.bf16.msra.mxu1 %v3507_v3  ;;  %3288 = vmatprep.subr.bf16.mxu0 %v3507_v3 }
 0x2ff   :  { %3306 = vmatprep.subr.bf16.mxu1 %v3507_v3 }
 0x301   :  { %3289 = vmatpush3.bf16.msra.mxu0 %v3507_v3 }
 0x302   :  { %3307 = vmatpush3.bf16.msra.mxu1 %v3507_v3  ;;  %3290 = vmatprep.subr.bf16.mxu0 %v3507_v3 }
 0x303   :  { %3308 = vmatprep.subr.bf16.mxu1 %v3507_v3 }
 0x305   :  { %3291 = vmatpush3.bf16.msra.mxu0 %v3507_v3 }
 0x306   :  { %3309 = vmatpush3.bf16.msra.mxu1 %v3507_v3  ;;  %3292 = vmatprep.subr.bf16.mxu0 %v3507_v3 }
 0x307   :  { %3310 = vmatprep.subr.bf16.mxu1 %v3507_v3 }
 0x309   :  { %3293 = vmatpush3.bf16.msra.mxu0 %v3507_v3 }
 0x30a   :  { %3311 = vmatpush3.bf16.msra.mxu1 %v3507_v3  ;;  %3294 = vmatprep.subr.bf16.mxu0 %v3507_v3 }
 0x30b   :  { %3312 = vmatprep.subr.bf16.mxu1 %v3507_v3 }
 0x30d   :  { %3295 = vmatpush3.bf16.msra.mxu0 %v3507_v3 }
 0x30e   :  { %3313 = vmatpush3.bf16.msra.mxu1 %v3507_v3  ;;  %3296 = vmatprep.subr.bf16.mxu0 %v3507_v3 }
 0x30f   :  { %3314 = vmatprep.subr.bf16.mxu1 %v3507_v3 }
 0x311   :  { %3297 = vmatpush3.bf16.msra.mxu0 %v3507_v3 }
 0x312   :  { %3315 = vmatpush3.bf16.msra.mxu1 %v3507_v3  ;;  %3298 = vmatprep.subr.bf16.mxu0 %v3507_v3 }
 0x313   :  { %3332 = vmatprep.subr.bf16.mxu1 %v3507_v3 }
 0x315   :  { %1311 = vmatmul.mubr.f32.vlgmr.msra.gmra.mrb[10].mxu1 %v694_v54  ;;  %3299 = vmatpush3.bf16.msra.mxu0 %v3507_v3 }
 0x316   :  { %3316 = vmatprep.subr.bf16.mxu0 %v3507_v3  ;;  %3333 = vmatpush3.bf16.msra.mxu1 %v3507_v3 }
 0x317   :  { %3334 = vmatprep.subr.bf16.mxu1 %v3507_v3 }
 0x318   :  { %1241 = vmatmul.mubr.f32.vlgmr.msra.gmra.mrb[10].mxu0 %v1174_v56 }
 0x319   :  { %3317 = vmatpush3.bf16.msra.mxu0 %v3507_v3 }
 0x31a   :  { %3318 = vmatprep.subr.bf16.mxu0 %v3507_v3  ;;  %3335 = vmatpush3.bf16.msra.mxu1 %v3507_v3 }
 0x31b   :  { %3336 = vmatprep.subr.bf16.mxu1 %v3507_v3 }
 0x31d   :  { %3319 = vmatpush3.bf16.msra.mxu0 %v3507_v3 }
 0x31e   :  { %3320 = vmatprep.subr.bf16.mxu0 %v3507_v3  ;;  %3337 = vmatpush3.bf16.msra.mxu1 %v3507_v3 }
 0x31f   :  { %3338 = vmatprep.subr.bf16.mxu1 %v3507_v3 }
 0x321   :  { %3321 = vmatpush3.bf16.msra.mxu0 %v3507_v3 }
 0x322   :  { %3322 = vmatprep.subr.bf16.mxu0 %v3507_v3  ;;  %3339 = vmatpush3.bf16.msra.mxu1 %v3507_v3 }
 0x323   :  { %3340 = vmatprep.subr.bf16.mxu1 %v3507_v3 }
 0x325   :  { %3323 = vmatpush3.bf16.msra.mxu0 %v3507_v3 }
 0x326   :  { %3324 = vmatprep.subr.bf16.mxu0 %v3507_v3  ;;  %3341 = vmatpush3.bf16.msra.mxu1 %v3507_v3 }
 0x327   :  { %3342 = vmatprep.subr.bf16.mxu1 %v3507_v3 }
 0x329   :  { %3325 = vmatpush3.bf16.msra.mxu0 %v3507_v3 }
 0x32a   :  { %3326 = vmatprep.subr.bf16.mxu0 %v3507_v3  ;;  %3343 = vmatpush3.bf16.msra.mxu1 %v3507_v3 }
 0x32b   :  { %3344 = vmatprep.subr.bf16.mxu1 %v3507_v3 }
 0x32d   :  { %3327 = vmatpush3.bf16.msra.mxu0 %v3507_v3 }
 0x32e   :  { %3328 = vmatprep.subr.bf16.mxu0 %v3507_v3  ;;  %3345 = vmatpush3.bf16.msra.mxu1 %v3507_v3 }
 0x32f   :  { %3346 = vmatprep.subr.bf16.mxu1 %v3507_v3 }
 0x331   :  { %3329 = vmatpush3.bf16.msra.mxu0 %v3507_v3 }
 0x332   :  { %3330 = vmatprep.subr.bf16.mxu0 %v3507_v3  ;;  %3347 = vmatpush3.bf16.msra.mxu1 %v3507_v3 }
 0x333   :  { %3348 = vmatprep.subr.bf16.mxu1 %v3507_v3 }
 0x335   :  { %3331 = vmatpush3.bf16.msra.mxu0 %v3507_v3 }
 0x387   :  { %v2631_v57 = vpop.f32.mrb[4].mxu1 }
 0x388   :  { %v2632_v59 = vpop.f32.mrb[5].mxu1 }
 0x389   :  { %v2633_v60 = vadd.f32 %v2632_v59, %v2631_v57 }
 0x38b   :  { %v2596_v61 = vpop.f32.mrb[4].mxu0 }
 0x38c   :  { %v2597_v62 = vpop.f32.mrb[5].mxu0 }
 0x38d   :  { %v2598_v63 = vadd.f32 %v2597_v62, %v2596_v61 }
 0x38f   :  { %v889_v7 = vadd.f32 %v2633_v60, %v2598_v63 }
 0x391   :  { %v1316_v18 = vmul.f32 0.001953125, %v889_v7 }
 0x393   :  { %v1318_v21 = vmul.f32 %v1316_v18, %v1316_v18 }
 0x3a7   :  { %v2701_v4 = vpop.f32.mrb[6].mxu1 }
 0x3a8   :  { %v2702_v2 = vpop.f32.mrb[7].mxu1 }
 0x3a9   :  { %v2703_v13 = vadd.f32 %v2702_v2, %v2701_v4 }
 0x3ab   :  { %v2666_v15 = vpop.f32.mrb[6].mxu0 }
 0x3ac   :  { %v2667_v16 = vpop.f32.mrb[7].mxu0 }
 0x3ad   :  { %v2668_v19 = vadd.f32 %v2667_v16, %v2666_v15 }
 0x3af   :  { %v1031_v20 = vadd.f32 %v2703_v13, %v2668_v19 }
 0x3b1   :  { %v1317_v22 = vmul.f32 0.001953125, %v1031_v20 }
 0x3b3   :  { %v1319_v23 = vsub.f32 %v1317_v22, %v1318_v21 }
 0x3b5   :  { %v1320_v24 = vmax.f32 %v1319_v23, 0.0 }
 0x3b7   :  { %v1322_v25 = vadd.f32 1e-05, %v1320_v24 }
 0x3b9   :  { %3475 = vrsqrt.f32 %v1322_v25  ;;  %v4151_v25 = vld [vmem:[%s4334_s6 + $0x8] sm:$0xff] }
 0x3c3   :  { %v3476_v26 = vpop.eup %3475 }
 0x3c4   :  { %v1324_v27 = vmul.f32 %v3476_v26, %v1321_v6 }
 0x3c6   :  { %1346 = vperm.xlu0 %3471, %v1324_v27   ;;  %v1326_v28 = vmul.f32 %v1324_v27, %v1316_v18 }
 0x3c7   :  { %v2771_v29 = vpop.f32.mrb[8].mxu1 }
 0x3c8   :  { %v2772_v30 = vpop.f32.mrb[9].mxu1  ;;  %v1327_v17 = vsub.f32 %v1325_v49, %v1326_v28  ;;  %v3514_v49 = vmov 0.0  }
 0x3c9   :  { %v2773_v31 = vadd.f32 %v2772_v30, %v2771_v29 }
 0x3cb   :  { %v2736_v32 = vpop.f32.mrb[8].mxu0 }
 0x3cc   :  { %v2737_v33 = vpop.f32.mrb[9].mxu0 }
 0x3cd   :  { %v2738_v1 = vadd.f32 %v2737_v33, %v2736_v32 }
 0x3cf   :  { %v1171_v34 = vadd.f32 %v2773_v31, %v2738_v1 }
 0x3d1   :  { %v1328_v38 = vmul.f32 0.001953125, %v1171_v34 }
 0x3d3   :  { %v1330_v41 = vmul.f32 %v1328_v38, %v1328_v38 }
 0x3e8   :  { %v2841_v9 = vpop.f32.mrb[10].mxu1 }
 0x3e9   :  { %v2842_v35 = vpop.f32.mrb[11].mxu1 }
 0x3ea   :  { %v2843_v36 = vadd.f32 %v2842_v35, %v2841_v9 }
 0x3eb   :  { %v2806_v8 = vpop.f32.mrb[10].mxu0 }
 0x3ec   :  { %v2807_v14 = vpop.f32.mrb[11].mxu0 }
 0x3ed   :  { %v2808_v39 = vadd.f32 %v2807_v14, %v2806_v8 }
 0x3ef   :  { %v1313_v40 = vadd.f32 %v2843_v36, %v2808_v39 }
 0x3f1   :  { %v1329_v42 = vmul.f32 0.001953125, %v1313_v40 }
 0x3f3   :  { %v1331_v43 = vsub.f32 %v1329_v42, %v1330_v41  ;;  %v4160_v41 = vld [vmem:[%s4335_s7 + $0x8] sm:$0xff]  ;;  %v4165_v42 = vld [vmem:[%s4335_s7] sm:$0xff] }
 0x3f5   :  { %v1332_v44 = vmax.f32 %v1331_v43, 0.0 }
 0x3f7   :  { %v1334_v45 = vadd.f32 1e-05, %v1332_v44 }
 0x3f9   :  { %3477 = vrsqrt.f32 %v1334_v45 }
 0x403   :  { %v3478_v47 = vpop.eup %3477 }
 0x404   :  { %v1336_v48 = vmul.f32 %v3478_v47, %v1333_v46 }
 0x406   :  { %1360 = vperm.xlu1 %3472, %v1336_v48   ;;  %v1338_v51 = vmul.f32 %v1336_v48, %v1328_v38 }
 0x408   :  { %v1339_v52 = vsub.f32 %v1337_v50, %v1338_v51 }
 0x40a   :  { %1353 = vperm.xlu1 %3472, %v1327_v17   ;;  %1367 = vperm.xlu0 %3471, %v1339_v52  }
 0x445   :  { %v1347_v5 = vpop.permute.xlu0 %1346 }
 0x446   :  { %v1349_v56 = vmul.f32 %v1347_v5, %v3857_v55  ;;  %v1350_v59 = vmul.f32 %v1347_v5, %v3863_v58  ;;  %v1731_v4 = vmul.f32 %v1347_v5, %v3876_v12  ;;  %v1730_v12 = vmul.f32 %v1347_v5, %v3873_v11  ;;  %v4146_v11 = vld [vmem:[%s4334_s6] sm:$0xff] }
 0x485   :  { %v4096_v54 = vpop.permute.xlu1 %1360 }
 0x486   :  { %v1363_v57 = vmul.f32 %v4096_v54, %v4002_v0  ;;  %v1364_v60 = vmul.f32 %v4096_v54, %v3950_v37 }
 0x489   :  { %v1354_v61 = vpop.permute.xlu1 %1353  ;;  %v4104_v62 = vpop.permute.xlu0 %1367 }
 0x48a   :  { %v4106_v63 = vadd.f32 %v1354_v61, %v1349_v56  ;;  %v4109_v7 = vadd.f32 %v4104_v62, %v1363_v57  ;;  %v4112_v2 = vadd.f32 %v1354_v61, %v1350_v59  ;;  %v4115_v55 = vadd.f32 %v4104_v62, %v1364_v60 }
 0x48b   :  { %v4119_v58 = vadd.f32 %v1731_v4, %v1354_v61  ;;  %v4140_v37 = vadd.f32 %v1730_v12, %v1354_v61 }
 0x48c   :  { %1436 = vmatprep.mubr.f32.mxu0 %v4112_v2  ;;  %1507 = vmatprep.mubr.f32.mxu1 %v4115_v55 }
 0x48d   :  { %1437 = vmatmul.mubr.f32.vlgmr.msra.gmra.mrb[12].mxu0 %v4106_v63  ;;  %1508 = vmatmul.mubr.f32.vlgmr.msra.gmra.mrb[12].mxu1 %v4109_v7 }
 0x48e   :  { %3349 = vmatpush3.bf16.msra.mxu1 %v3507_v3  ;;  %1802 = vmatprep.mubr.f32.mxu1 %v4119_v58 }
 0x48f   :  { %3350 = vmatprep.subr.bf16.mxu1 %v3507_v3  ;;  %1647 = vmatprep.mubr.f32.mxu0 %v3514_v49 }
 0x492   :  { %3351 = vmatpush3.bf16.msra.mxu1 %v3507_v3 }
 0x493   :  { %3352 = vmatprep.subr.bf16.mxu1 %v3507_v3 }
 0x496   :  { %3353 = vmatpush3.bf16.msra.mxu1 %v3507_v3 }
 0x497   :  { %3354 = vmatprep.subr.bf16.mxu1 %v3507_v3 }
 0x49a   :  { %3355 = vmatpush3.bf16.msra.mxu1 %v3507_v3 }
 0x49b   :  { %3356 = vmatprep.subr.bf16.mxu1 %v3507_v3 }
 0x49e   :  { %3357 = vmatpush3.bf16.msra.mxu1 %v3507_v3 }
 0x49f   :  { %3358 = vmatprep.subr.bf16.mxu1 %v3507_v3 }
 0x4a2   :  { %3359 = vmatpush3.bf16.msra.mxu1 %v3507_v3 }
 0x4a3   :  { %3360 = vmatprep.subr.bf16.mxu1 %v3507_v3 }
 0x4a6   :  { %3361 = vmatpush3.bf16.msra.mxu1 %v3507_v3 }
 0x4a7   :  { %3362 = vmatprep.subr.bf16.mxu1 %v3507_v3 }
 0x4aa   :  { %3363 = vmatpush3.bf16.msra.mxu1 %v3507_v3 }
 0x4ad   :  { %1803 = vmatmul.mubr.f32.vlgmr.msra.gmra.mrb[14].mxu1 %v4140_v37 }
 0x4ae   :  { %2008 = vmatprep.mubr.f32.mxu1 %v3514_v49 }
 0x560   :  { %v2876_v0 = vpop.f32.mrb[12].mxu0  ;;  %v2911_v13 = vpop.f32.mrb[12].mxu1 }
 0x561   :  { %v2877_v15 = vpop.f32.mrb[13].mxu0  ;;  %v2912_v16 = vpop.f32.mrb[13].mxu1 }
 0x562   :  { %v2878_v18 = vadd.f32 %v2877_v15, %v2876_v0  ;;  %v2913_v19 = vadd.f32 %v2912_v16, %v2911_v13 }
 0x564   :  { %v1442_v20 = vmul.f32 0.00390625, %v2878_v18  ;;  %v1513_v21 = vmul.f32 0.00390625, %v2913_v19 }
 0x566   :  { %1516 = vperm.xlu1 %3472, %v1442_v20   ;;  %1530 = vperm.xlu0 %3471, %v1513_v21  }
 0x580   :  { %v2946_v22 = vpop.f32.mrb[14].mxu1 }
 0x581   :  { %v2947_v23 = vpop.f32.mrb[15].mxu1 }
 0x582   :  { %v2948_v24 = vadd.f32 %v2947_v23, %v2946_v22 }
 0x584   :  { %v1808_v48 = vmul.f32 0.00390625, %v2948_v24 }
 0x5e5   :  { %v1517_v6 = vpop.permute.xlu1 %1516  ;;  %v1531_v26 = vpop.permute.xlu0 %1530 }
 0x5e6   :  { %v1519_v27 = vmul.f32 %v1517_v6, %v4146_v11  ;;  %v1533_v28 = vmul.f32 %v1531_v26, %v4151_v25 }
 0x5e8   :  { %v1521_v29 = vsel %vm1520_vm12, %v1519_v27, 0.0  ;;  %v1534_v30 = vsel %vm1520_vm12, %v1533_v28, 0.0 }
 0x5e9   :  { %v1522_v31 = vrot.slane %v1521_v29, 4  ;;  %v1535_v32 = vrot.slane %v1534_v30, 4 }
 0x5eb   :  { %v1523_v33 = vadd.f32 %v1522_v31, %v1521_v29  ;;  %v1536_v1 = vadd.f32 %v1535_v32, %v1534_v30  ;;  %v1735_v29 = vmul.f32 %v4096_v54, %v3959_v10  ;;  %v4191_v30 = vld [vmem:[%s4332_s4] sm:$0xff]  ;;  %v1734_v10 = vmul.f32 %v4096_v54, %v4012_v53 }
 0x5ed   :  { %v1524_v34 = vrot.slane %v1523_v33, 2  ;;  %v1537_v9 = vrot.slane %v1536_v1, 2  ;;  %v4194_v31 = vadd.f32 %v1735_v29, %v4104_v62  ;;  %v1736_v32 = vadd.f32 %v1734_v10, %v4104_v62 }
 0x5ef   :  { %v1525_v35 = vadd.f32 %v1524_v34, %v1523_v33  ;;  %v1538_v36 = vadd.f32 %v1537_v9, %v1536_v1 }
 0x5f1   :  { %v1526_v8 = vrot.slane %v1525_v35, 1  ;;  %v1539_v14 = vrot.slane %v1538_v36, 1 }
 0x5f3   :  { %v1527_v38 = vadd.f32 %v1526_v8, %v1525_v35  ;;  %v1540_v39 = vadd.f32 %v1539_v14, %v1538_v36 }
 0x5f5   :  { %v1541_v40 = vadd.f32 %v1540_v39, %v1527_v38 }
 0x5f7   :  { %v1542_v43 = vmax.f32 %v1541_v40, 0.0 }
 0x5f9   :  { %v1544_v44 = vmul.f32 %v1542_v43, %v4160_v41  ;;  %v1543_v45 = vmul.f32 %v1542_v43, %v4165_v42 }
 0x5fb   :  { %v1548_v46 = vsel %vm1520_vm12, %v1544_v44, 0.0  ;;  %v1545_v47 = vsel %vm1520_vm12, %v1543_v45, 0.0 }
 0x5fc   :  { %1549 = vadd.xlane.f32.xlu1 %v1548_v46  ;;  %1546 = vadd.xlane.f32.xlu0 %v1545_v47 }
 0x612   :  { %1882 = vperm.xlu0 %3471, %v1808_v48  }
 0x689   :  { %v1550_v50 = vpop.xlane.xlu1 %1549  ;;  %v1547_v51 = vpop.xlane.xlu0 %1546 }
 0x68a   :  { %v1552_v17 = vadd.f32 3.0, %v1550_v50  ;;  %v1551_v52 = vadd.f32 3.0, %v1547_v51 }
 0x68c   :  { %v1554_v5 = vmax.f32 %v1552_v17, 0.0  ;;  %v1553_v56 = vmax.f32 %v1551_v52, 0.0 }
 0x68e   :  { %v1556_v57 = vmin.f32 %v1554_v5, 6.0  ;;  %v1555_v59 = vmin.f32 %v1553_v56, 6.0 }
 0x690   :  { %v1558_v60 = vmul.f32 0.16666667, %v1556_v57  ;;  %v1557_v61 = vmul.f32 0.16666667, %v1555_v59 }
 0x691   :  { %v1883_v9 = vpop.permute.xlu0 %1882 }
 0x692   :  { %v1569_v4 = vmul.f32 %v1558_v60, %v4109_v7  ;;  %v1570_v12 = vmul.f32 %v1558_v60, %v4115_v55  ;;  %v1559_v0 = vmul.f32 %v1557_v61, %v4106_v63  ;;  %v1560_v13 = vmul.f32 %v1557_v61, %v4112_v2  ;;  %v4180_v63 = vld [vmem:[%s4333_s5] sm:$0xff] }
 0x693   :  { %v1885_v35 = vmul.f32 %v1883_v9, %v4146_v11 }
 0x694   :  { %v1571_v15 = vadd.f32 3.0, %v1569_v4  ;;  %v1572_v16 = vadd.f32 3.0, %v1570_v12  ;;  %v1561_v18 = vadd.f32 3.0, %v1559_v0  ;;  %v1562_v19 = vadd.f32 3.0, %v1560_v13 }
 0x695   :  { %v1886_v36 = vsel %vm1520_vm12, %v1885_v35, 0.0 }
 0x696   :  { %v1573_v20 = vmax.f32 %v1571_v15, 0.0  ;;  %v1563_v21 = vmax.f32 %v1561_v18, 0.0  ;;  %v1574_v22 = vmax.f32 %v1572_v16, 0.0  ;;  %v1564_v23 = vmax.f32 %v1562_v19, 0.0 }
 0x697   :  { %v1887_v8 = vrot.slane %v1886_v36, 4 }
 0x698   :  { %v1575_v24 = vmin.f32 %v1573_v20, 6.0  ;;  %v1576_v6 = vmin.f32 %v1574_v22, 6.0  ;;  %v1566_v26 = vmin.f32 %v1564_v23, 6.0  ;;  %v1565_v28 = vmin.f32 %v1563_v21, 6.0 }
 0x699   :  { %v1888_v14 = vadd.f32 %v1887_v8, %v1886_v36 }
 0x69a   :  { %v1577_v27 = vmul.f32 0.16666667, %v1575_v24  ;;  %v1578_v7 = vmul.f32 0.16666667, %v1576_v6  ;;  %v1568_v2 = vmul.f32 0.16666667, %v1566_v26 }
 0x69b   :  { %v1567_v55 = vmul.f32 0.16666667, %v1565_v28  ;;  %v1889_v40 = vrot.slane %v1888_v14, 2 }
 0x69c   :  { %1583 = vmatprep.subr.mxu0 %v1578_v7 }
 0x69d   :  { %1584 = vmatpush1.msra.mxu0 %v1577_v27  ;;  %v1890_v45 = vadd.f32 %v1889_v40, %v1888_v14 }
 0x69e   :  { %2420 = vmatmul.mubr.msk.f32.vlgmr.msra.gmra.mrb[14].mxu0 %vm1579_vm13, %v4180_v63  ;;  %1657 = vmatprep.subr.mxu0 %v1568_v2 }
 0x69f   :  { %1658 = vmatpush1.msra.mxu0 %v1567_v55  ;;  %1721 = vmatprep.mubr.f32.mxu0 %v3514_v49  ;;  %v1891_v48 = vrot.slane %v1890_v45, 1 }
 0x6a0   :  { %3364 = vmatprep.subr.bf16.mxu0 %v3507_v3 }
 0x6a1   :  { %v1892_v17 = vadd.f32 %v1891_v48, %v1890_v45 }
 0x6a6   :  { %2421 = vmatmul.mubr.msk.f32.vlgmr.msra.gmra.mrb[14].mxu0 %vm1579_vm13, %v4191_v30 }
 0x6a7   :  { %3365 = vmatpush3.bf16.msra.mxu0 %v3507_v3  ;;  %1873 = vmatprep.mubr.f32.mxu0 %v4194_v31 }
 0x6a8   :  { %3366 = vmatprep.subr.bf16.mxu0 %v3507_v3 }
 0x6ab   :  { %3367 = vmatpush3.bf16.msra.mxu0 %v3507_v3 }
 0x6ac   :  { %3368 = vmatprep.subr.bf16.mxu0 %v3507_v3 }
 0x6af   :  { %3369 = vmatpush3.bf16.msra.mxu0 %v3507_v3 }
 0x6b0   :  { %3370 = vmatprep.subr.bf16.mxu0 %v3507_v3 }
 0x6b3   :  { %3371 = vmatpush3.bf16.msra.mxu0 %v3507_v3 }
 0x6b4   :  { %3372 = vmatprep.subr.bf16.mxu0 %v3507_v3 }
 0x6b7   :  { %3373 = vmatpush3.bf16.msra.mxu0 %v3507_v3 }
 0x6b8   :  { %3374 = vmatprep.subr.bf16.mxu0 %v3507_v3 }
 0x6bb   :  { %3375 = vmatpush3.bf16.msra.mxu0 %v3507_v3 }
 0x6bc   :  { %3376 = vmatprep.subr.bf16.mxu0 %v3507_v3 }
 0x6bf   :  { %3377 = vmatpush3.bf16.msra.mxu0 %v3507_v3 }
 0x6c0   :  { %3378 = vmatprep.subr.bf16.mxu0 %v3507_v3 }
 0x6c3   :  { %3379 = vmatpush3.bf16.msra.mxu0 %v3507_v3 }
 0x6c4   :  { %3380 = vmatprep.subr.bf16.mxu0 %v3507_v3 }
 0x6c6   :  { %1874 = vmatmul.mubr.f32.vlgmr.msra.gmra.mrb[16].mxu0 %v1736_v32 }
 0x6c7   :  { %3381 = vmatpush3.bf16.msra.mxu0 %v3507_v3 }
 0x6c8   :  { %3382 = vmatprep.subr.bf16.mxu0 %v3507_v3 }
 0x6cb   :  { %3383 = vmatpush3.bf16.msra.mxu0 %v3507_v3 }
 0x6cc   :  { %3384 = vmatprep.subr.bf16.mxu0 %v3507_v3 }
 0x6cf   :  { %3385 = vmatpush3.bf16.msra.mxu0 %v3507_v3 }
 0x6d0   :  { %3386 = vmatprep.subr.bf16.mxu0 %v3507_v3 }
 0x6d3   :  { %3387 = vmatpush3.bf16.msra.mxu0 %v3507_v3 }
 0x6d4   :  { %3388 = vmatprep.subr.bf16.mxu0 %v3507_v3 }
 0x6d7   :  { %3389 = vmatpush3.bf16.msra.mxu0 %v3507_v3 }
 0x6d8   :  { %3390 = vmatprep.subr.bf16.mxu0 %v3507_v3 }
 0x6db   :  { %3391 = vmatpush3.bf16.msra.mxu0 %v3507_v3 }
 0x6dc   :  { %3392 = vmatprep.subr.bf16.mxu0 %v3507_v3 }
 0x6df   :  { %3393 = vmatpush3.bf16.msra.mxu0 %v3507_v3 }
 0x6e0   :  { %3394 = vmatprep.subr.bf16.mxu0 %v3507_v3 }
 0x6e3   :  { %3395 = vmatpush3.bf16.msra.mxu0 %v3507_v3 }
 0x6e4   :  { %3412 = vmatprep.subr.bf16.mxu0 %v3507_v3 }
 0x779   :  { %v4234_v53 = vpop.f32.mrb[14].mxu0 }
 0x77a   :  { %v4236_v54 = vpop.f32.mrb[15].mxu0 }
 0x799   :  { %v2981_v62 = vpop.f32.mrb[16].mxu0 }
 0x79a   :  { %v2982_v33 = vpop.f32.mrb[17].mxu0 }
 0x79b   :  { %v2983_v1 = vadd.f32 %v2982_v33, %v2981_v62 }
 0x79d   :  { %v1879_v34 = vmul.f32 0.00390625, %v2983_v1 }
 0x79f   :  { %1895 = vperm.xlu1 %3472, %v1879_v34  }
 0x81e   :  { %v1896_v38 = vpop.permute.xlu1 %1895 }
 0x81f   :  { %v1898_v39 = vmul.f32 %v1896_v38, %v4151_v25 }
 0x821   :  { %v1899_v43 = vsel %vm1520_vm12, %v1898_v39, 0.0 }
 0x822   :  { %v1900_v44 = vrot.slane %v1899_v43, 4 }
 0x824   :  { %v1901_v46 = vadd.f32 %v1900_v44, %v1899_v43 }
 0x826   :  { %v1902_v47 = vrot.slane %v1901_v46, 2 }
 0x828   :  { %v1903_v50 = vadd.f32 %v1902_v47, %v1901_v46 }
 0x82a   :  { %v1904_v51 = vrot.slane %v1903_v50, 1 }
 0x82c   :  { %v1905_v52 = vadd.f32 %v1904_v51, %v1903_v50 }
 0x82e   :  { %v1906_v11 = vadd.f32 %v1905_v52, %v1892_v17 }
 0x830   :  { %v1907_v5 = vmax.f32 %v1906_v11, 0.0  ;;  %v2373_v11 = vld [vmem:[%s4343_s15] sm:$0xff]  ;;  %s3481_s15 = scalar_lea.vmem %s2409_s3, 512 }
 0x831   :  { %p3482_p0 = scmp.ne.s32.totalorder %s2409_s3, %s3481_s15  ;;  %p3487_p2 = scmp.lt.s32.totalorder %s3481_s15, %s3481_s15 }
 0x832   :  { %v1909_v56 = vmul.f32 %v1907_v5, %v4160_v41  ;;  %v1908_v57 = vmul.f32 %v1907_v5, %v4165_v42 }
 0x833   :  { %p3488_p3 = por %p3487_p2, %p3486_p1 }
 0x834   :  { %v1913_v25 = vsel %vm1520_vm12, %v1909_v56, 0.0  ;;  %v1910_v59 = vsel %vm1520_vm12, %v1908_v57, 0.0  ;;  %v2377_v57 = vld [vmem:[%s4344_s16] sm:$0xff] }
 0x835   :  { %1914 = vadd.xlane.f32.xlu1 %v1913_v25  ;;  %1911 = vadd.xlane.f32.xlu0 %v1910_v59  ;;  %p3489_p4 = pnand %p3488_p3, %p3482_p0 }
 0x8c2   :  { %v1915_v60 = vpop.xlane.xlu1 %1914  ;;  %v1912_v61 = vpop.xlane.xlu0 %1911 }
 0x8c3   :  { %v1917_v4 = vadd.f32 3.0, %v1915_v60  ;;  %v1916_v12 = vadd.f32 3.0, %v1912_v61 }
 0x8c5   :  { %v1919_v0 = vmax.f32 %v1917_v4, 0.0  ;;  %v1918_v13 = vmax.f32 %v1916_v12, 0.0 }
 0x8c7   :  { %v1921_v15 = vmin.f32 %v1919_v0, 6.0  ;;  %v1920_v16 = vmin.f32 %v1918_v13, 6.0 }
 0x8c9   :  { %v1923_v18 = vmul.f32 0.16666667, %v1921_v15  ;;  %v1922_v19 = vmul.f32 0.16666667, %v1920_v16 }
 0x8cb   :  { %v1934_v20 = vmul.f32 %v1923_v18, %v1736_v32  ;;  %v1935_v41 = vmul.f32 %v1923_v18, %v4194_v31  ;;  %v1924_v42 = vmul.f32 %v1922_v19, %v4140_v37  ;;  %v1925_v21 = vmul.f32 %v1922_v19, %v4119_v58 }
 0x8cc   :  { %v1729_v58 = vmul.f32 %v4236_v54, %v4236_v54  ;;  %v1728_v37 = vmul.f32 %v4234_v53, %v4234_v53 }
 0x8cd   :  { %v1936_v22 = vadd.f32 3.0, %v1934_v20  ;;  %v1937_v23 = vadd.f32 3.0, %v1935_v41  ;;  %v1926_v24 = vadd.f32 3.0, %v1924_v42  ;;  %v1927_v6 = vadd.f32 3.0, %v1925_v21 }
 0x8cf   :  { %v1938_v26 = vmax.f32 %v1936_v22, 0.0  ;;  %v1928_v27 = vmax.f32 %v1926_v24, 0.0  ;;  %v1939_v28 = vmax.f32 %v1937_v23, 0.0  ;;  %v1929_v7 = vmax.f32 %v1927_v6, 0.0 }
 0x8d1   :  { %v1940_v2 = vmin.f32 %v1938_v26, 6.0  ;;  %v1941_v55 = vmin.f32 %v1939_v28, 6.0  ;;  %v1931_v29 = vmin.f32 %v1929_v7, 6.0  ;;  %v1930_v10 = vmin.f32 %v1928_v27, 6.0 }
 0x8d3   :  { %v1942_v62 = vmul.f32 0.16666667, %v1940_v2  ;;  %v1943_v32 = vmul.f32 0.16666667, %v1941_v55  ;;  %v1933_v31 = vmul.f32 0.16666667, %v1931_v29 }
 0x8d4   :  { %v1932_v33 = vmul.f32 0.16666667, %v1930_v10 }
 0x8d5   :  { %1944 = vmatprep.subr.mxu1 %v1943_v32 }
 0x8d6   :  { %1945 = vmatpush1.msra.mxu1 %v1942_v62 }
 0x8d7   :  { %2422 = vmatmul.mubr.msk.f32.vlgmr.msra.gmra.mrb[16].mxu1 %vm1579_vm13, %v4180_v63  ;;  %2015 = vmatprep.subr.mxu1 %v1933_v31 }
 0x8d8   :  { %2016 = vmatpush1.msra.mxu1 %v1932_v33  ;;  %2079 = vmatprep.mubr.f32.mxu1 %v3514_v49 }
 0x8d9   :  { %3396 = vmatprep.subr.bf16.mxu1 %v3507_v3 }
 0x8df   :  { %2423 = vmatmul.mubr.msk.f32.vlgmr.msra.gmra.mrb[16].mxu1 %vm1579_vm13, %v4191_v30 }
 0x8e0   :  { %3397 = vmatpush3.bf16.msra.mxu1 %v3507_v3  ;;  %2220 = vmatprep.mubr.f32.mxu1 %v4236_v54 }
 0x8e1   :  { %3398 = vmatprep.subr.bf16.mxu1 %v3507_v3 }
 0x8e4   :  { %3399 = vmatpush3.bf16.msra.mxu1 %v3507_v3 }
 0x8e5   :  { %3400 = vmatprep.subr.bf16.mxu1 %v3507_v3 }
 0x8e8   :  { %3401 = vmatpush3.bf16.msra.mxu1 %v3507_v3 }
 0x8e9   :  { %3402 = vmatprep.subr.bf16.mxu1 %v3507_v3 }
 0x8ec   :  { %3403 = vmatpush3.bf16.msra.mxu1 %v3507_v3 }
 0x8ed   :  { %3404 = vmatprep.subr.bf16.mxu1 %v3507_v3 }
 0x8f0   :  { %3405 = vmatpush3.bf16.msra.mxu1 %v3507_v3 }
 0x8f1   :  { %3406 = vmatprep.subr.bf16.mxu1 %v3507_v3 }
 0x8f4   :  { %3407 = vmatpush3.bf16.msra.mxu1 %v3507_v3 }
 0x8f5   :  { %3408 = vmatprep.subr.bf16.mxu1 %v3507_v3 }
 0x8f8   :  { %3409 = vmatpush3.bf16.msra.mxu1 %v3507_v3 }
 0x8f9   :  { %3410 = vmatprep.subr.bf16.mxu1 %v3507_v3 }
 0x8fc   :  { %3411 = vmatpush3.bf16.msra.mxu1 %v3507_v3 }
 0x8fd   :  { %3428 = vmatprep.subr.bf16.mxu1 %v3507_v3 }
 0x8ff   :  { %2221 = vmatmul.mubr.f32.vlgmr.msra.gmra.mrb[18].mxu1 %v4234_v53 }
 0x900   :  { %3429 = vmatpush3.bf16.msra.mxu1 %v3507_v3  ;;  %2362 = vmatprep.mubr.f32.mxu1 %v1729_v58 }
 0x901   :  { %3430 = vmatprep.subr.bf16.mxu1 %v3507_v3 }
 0x904   :  { %3431 = vmatpush3.bf16.msra.mxu1 %v3507_v3 }
 0x905   :  { %3432 = vmatprep.subr.bf16.mxu1 %v3507_v3 }
 0x908   :  { %3433 = vmatpush3.bf16.msra.mxu1 %v3507_v3 }
 0x909   :  { %3434 = vmatprep.subr.bf16.mxu1 %v3507_v3 }
 0x90c   :  { %3435 = vmatpush3.bf16.msra.mxu1 %v3507_v3 }
 0x90d   :  { %3436 = vmatprep.subr.bf16.mxu1 %v3507_v3 }
 0x910   :  { %3437 = vmatpush3.bf16.msra.mxu1 %v3507_v3 }
 0x911   :  { %3438 = vmatprep.subr.bf16.mxu1 %v3507_v3 }
 0x914   :  { %3439 = vmatpush3.bf16.msra.mxu1 %v3507_v3 }
 0x915   :  { %3440 = vmatprep.subr.bf16.mxu1 %v3507_v3 }
 0x918   :  { %3441 = vmatpush3.bf16.msra.mxu1 %v3507_v3 }
 0x919   :  { %3442 = vmatprep.subr.bf16.mxu1 %v3507_v3 }
 0x91c   :  { %3443 = vmatpush3.bf16.msra.mxu1 %v3507_v3 }
 0x91f   :  { %2363 = vmatmul.mubr.f32.vlgmr.msra.gmra.mrb[20].mxu1 %v1728_v37 }
 0x9b2   :  { %v2081_v49 = vpop.f32.mrb[16].mxu1 }
 0x9b3   :  { %v2083_v63 = vpop.f32.mrb[17].mxu1  ;;  %v2226_v34 = vmul.f32 %v2081_v49, %v2081_v49 }
 0x9b4   :  { %v2227_v30 = vmul.f32 %v2083_v63, %v2083_v63  ;;  %2150 = vmatprep.mubr.f32.mxu0 %v2083_v63 }
 0x9b5   :  { %2151 = vmatmul.mubr.f32.vlgmr.msra.gmra.mrb[18].mxu0 %v2081_v49 }
 0x9b6   :  { %3413 = vmatpush3.bf16.msra.mxu0 %v3507_v3  ;;  %2292 = vmatprep.mubr.f32.mxu0 %v2227_v30 }
 0x9b7   :  { %3414 = vmatprep.subr.bf16.mxu0 %v3507_v3 }
 0x9ba   :  { %3415 = vmatpush3.bf16.msra.mxu0 %v3507_v3 }
 0x9bb   :  { %3416 = vmatprep.subr.bf16.mxu0 %v3507_v3 }
 0x9be   :  { %3417 = vmatpush3.bf16.msra.mxu0 %v3507_v3 }
 0x9bf   :  { %3418 = vmatprep.subr.bf16.mxu0 %v3507_v3 }
 0x9c2   :  { %3419 = vmatpush3.bf16.msra.mxu0 %v3507_v3 }
 0x9c3   :  { %3420 = vmatprep.subr.bf16.mxu0 %v3507_v3 }
 0x9c6   :  { %3421 = vmatpush3.bf16.msra.mxu0 %v3507_v3 }
 0x9c7   :  { %3422 = vmatprep.subr.bf16.mxu0 %v3507_v3 }
 0x9ca   :  { %3423 = vmatpush3.bf16.msra.mxu0 %v3507_v3 }
 0x9cb   :  { %3424 = vmatprep.subr.bf16.mxu0 %v3507_v3 }
 0x9ce   :  { %3425 = vmatpush3.bf16.msra.mxu0 %v3507_v3 }
 0x9cf   :  { %3426 = vmatprep.subr.bf16.mxu0 %v3507_v3 }
 0x9d2   :  { %v3051_v1 = vpop.f32.mrb[18].mxu1  ;;  %3427 = vmatpush3.bf16.msra.mxu0 %v3507_v3 }
 0x9d3   :  { %v3052_v9 = vpop.f32.mrb[19].mxu1 }
 0x9d4   :  { %v3053_v35 = vadd.f32 %v3052_v9, %v3051_v1 }
 0x9d5   :  { %2293 = vmatmul.mubr.f32.vlgmr.msra.gmra.mrb[20].mxu0 %v2226_v34 }
 0x9f2   :  { %v3121_v36 = vpop.f32.mrb[20].mxu1 }
 0x9f3   :  { %v3122_v8 = vpop.f32.mrb[21].mxu1 }
 0x9f4   :  { %v3123_v14 = vadd.f32 %v3122_v8, %v3121_v36 }
 0xa88   :  { %v3016_v38 = vpop.f32.mrb[18].mxu0 }
 0xa89   :  { %v3017_v39 = vpop.f32.mrb[19].mxu0 }
 0xa8a   :  { %v3018_v40 = vadd.f32 %v3017_v39, %v3016_v38 }
 0xa8c   :  { %v2223_v43 = vadd.f32 %v3053_v35, %v3018_v40 }
 0xa8e   :  { %v2368_v46 = vmul.f32 0.001953125, %v2223_v43 }
 0xa90   :  { %v2370_v50 = vmul.f32 %v2368_v46, %v2368_v46 }
 0xaa8   :  { %v3086_v44 = vpop.f32.mrb[20].mxu0 }
 0xaa9   :  { %v3087_v45 = vpop.f32.mrb[21].mxu0 }
 0xaaa   :  { %v3088_v47 = vadd.f32 %v3087_v45, %v3086_v44 }
 0xaac   :  { %v2365_v48 = vadd.f32 %v3123_v14, %v3088_v47 }
 0xaae   :  { %v2369_v51 = vmul.f32 0.001953125, %v2365_v48 }
 0xab0   :  { %v2371_v17 = vsub.f32 %v2369_v51, %v2370_v50 }
 0xab2   :  { %v2372_v3 = vmax.f32 %v2371_v17, 0.0 }
 0xab4   :  { %v2374_v52 = vadd.f32 1e-05, %v2372_v3 }
 0xab6   :  { %3479 = vrsqrt.f32 %v2374_v52 }
 0xac0   :  { %v3480_v5 = vpop.eup %3479 }
 0xac1   :  { %v2376_v56 = vmul.f32 %v3480_v5, %v2373_v11 }
 0xac3   :  { %2382 = vperm.xlu0 %3471, %v2376_v56   ;;  %v2378_v25 = vmul.f32 %v2376_v56, %v2368_v46 }
 0xac5   :  { %v2379_v59 = vsub.f32 %v2377_v57, %v2378_v25 }
 0xac7   :  { %2389 = vperm.xlu1 %3472, %v2379_v59  }
 0xb42   :  { %v2383_v60 = vpop.permute.xlu0 %2382 }
 0xb43   :  { %v2385_v61 = vmul.f32 %v2383_v60, %v4234_v53  ;;  %v2386_v4 = vmul.f32 %v2383_v60, %v4236_v54  ;;  %v2396_v12 = vmul.f32 %v2383_v60, %v2081_v49  ;;  %v2397_v0 = vmul.f32 %v2383_v60, %v2083_v63 }
 0xb46   :  { %v2390_v13 = vpop.permute.xlu1 %2389 }
 0xb47   :  { %v2392_v15 = vadd.f32 %v2390_v13, %v2385_v61  ;;  %v2393_v16 = vadd.f32 %v2390_v13, %v2386_v4  ;;  %v2398_v18 = vadd.f32 %v2396_v12, %v2390_v13  ;;  %v2399_v19 = vadd.f32 %v2397_v0, %v2390_v13 }
 0xb49   :  { %2394 = vst [vmem:[#allocation2] sm:$0xff] %v2392_v15  ;;  %2395 = vst [vmem:[#allocation2 + $0x8] sm:$0xff] %v2393_v16 }
 0xb4a   :  { %2401 = vst [vmem:[#allocation2 + $0x10] sm:$0xff] %v2398_v18  ;;  %2402 = vst [vmem:[#allocation2 + $0x18] sm:$0xff] %v2399_v19 }
 0xb4b   :  { %3492 = shalt.err (!%p3489_p4)
}
 0xb4c   :  { %s3493_s8 = scalar_lea.hbm %s4345_s17, 512 }
 0xb4d   :  { %p3494_p5 = scmp.ne.s32.totalorder %s4345_s17, %s3493_s8  ;;  %p3497_p6 = scmp.lt.u32.totalorder %s3493_s8, %s4345_s17 }
 0xb4f   :  { %p3499_p7 = pnand %p3497_p6, %p3494_p5 }
 0xb51   :  { %3502 = shalt.err (!%p3499_p7)
}
 0xb52   :  { %s3516_s0 = smov 256  }
 0xb53   :  { %2414 = dma.vmem_to_hbm [thread:$0]  %s2409_s3, 512, %s4345_s17, [#allocation3], %s3516_s0, %s3516_s0, %s3512_s24  }
 0xb54   :  { %3503 = dma.done.wait [#allocation3], 512  }
 0xb55   :  { %3504 = vsyncadd [#allocation3], 4294966784 }
 0xb56   :  { %2418 = vsyncpa [#allocation3], 1 }

</bundles_post_ra>
